<compile_context>
chip_gen: v5e
topology: v5e:2x2
jax: 0.10.0
libtpu: 0.0.40
codegen_flags: <defaults>
</compile_context>

<pallas_src>
import functools

import jax
import jax.numpy as jnp
from jax.experimental import pallas as pl
from jax.experimental.pallas import tpu as pltpu

LN_EPS = 1e-5      # torch.nn.LayerNorm default eps
L2_EPS = 1e-12     # torch.nn.functional.normalize default eps


def _round_up(n, m):
    return ((n + m - 1) // m) * m


def _classifier_kernel(x_ref, gamma_ref, beta_ref, wt_ref, b_ref, out_ref, *, normalize):
    # x_ref: (tb, dim), gamma/beta: (1, dim), wt: (dim, l_pad) [pre-transposed],
    # b: (1, l_pad), out: (tb, l_pad) f32.
    x = x_ref[...].astype(jnp.float32)

    # ---- LayerNorm over the feature dim (two-pass, biased variance -> torch semantics) ----
    mean = jnp.mean(x, axis=-1, keepdims=True)
    xc = x - mean
    var = jnp.mean(xc * xc, axis=-1, keepdims=True)
    xn = xc * jax.lax.rsqrt(var + LN_EPS)
    xn = xn * gamma_ref[...].astype(jnp.float32) + beta_ref[...].astype(jnp.float32)

    # ---- L2 normalize fused as a post-matmul row scale (EUP rsqrt on tiny output) ----
    if normalize:
        sq = jnp.sum(xn * xn, axis=-1, keepdims=True)
        # rsqrt(max(sq, eps^2)) == 1 / max(||xn||, eps)  -> matches F.normalize.
        inv_n = jax.lax.rsqrt(jnp.maximum(sq, L2_EPS * L2_EPS))

    # ---- Linear: standard (1,0) contraction with the pre-transposed weight ----
    out = jnp.dot(xn.astype(wt_ref.dtype), wt_ref[...],
                  preferred_element_type=jnp.float32)
    if normalize:
        out = out * inv_n
    out = out + b_ref[...].astype(jnp.float32)
    out_ref[...] = out.astype(out_ref.dtype)


def prepare_classifier_params(gamma, beta, weight, bias, *, weight_dtype=jnp.bfloat16):
    """One-time parameter preparation (transpose + pad + cast). Call once, reuse."""
    num_labels, dim = weight.shape
    align = 256 if num_labels >= 256 else 128
    l_pad = _round_up(num_labels, align)

    wt = jnp.asarray(weight).T                       # (dim, num_labels): one-time transpose
    if weight_dtype is not None:
        wt = wt.astype(weight_dtype)
    b2 = jnp.asarray(bias, jnp.float32).reshape(1, num_labels)
    if l_pad != num_labels:
        wt = jnp.pad(wt, ((0, 0), (0, l_pad - num_labels)))
        b2 = jnp.pad(b2, ((0, 0), (0, l_pad - num_labels)))

    return {
        "gamma": jnp.asarray(gamma).reshape(1, dim),
        "beta": jnp.asarray(beta).reshape(1, dim),
        "weight_t": wt,          # (dim, l_pad)
        "bias": b2,              # (1, l_pad) f32
        "num_labels": num_labels,
        "dim": dim,
    }


def linear_classifier_apply(params, x_nchw, *, normalize=True, max_tile_b=512,
                            vmem_budget_bytes=28 * 1024 * 1024,
                            single_buffer_params=True):
    """Run the fused classifier kernel on x_nchw (B, C, H, W) with prepared params."""
    B = x_nchw.shape[0]
    dim = params["dim"]
    wt = params["weight_t"]
    gamma2, beta2, b2 = params["gamma"], params["beta"], params["bias"]
    l_pad = wt.shape[1]

    # Flatten exactly like torch's x.view(B, -1).
    x2d = x_nchw.reshape(B, dim)

    # ---- VMEM-budget-derived batch tile (conservative: fits v7x 64 MiB/TC) ----
    x_bytes = jnp.dtype(x2d.dtype).itemsize
    w_bytes = jnp.dtype(wt.dtype).itemsize
    p_bytes = jnp.dtype(gamma2.dtype).itemsize
    n_param_buf = 1 if single_buffer_params else 2
    resident = n_param_buf * (wt.size * w_bytes
                              + (gamma2.size + beta2.size) * p_bytes
                              + b2.size * 4)
    per_row = 2 * dim * x_bytes + 2 * l_pad * 4      # double-buffered x in + f32 out
    budget = max(vmem_budget_bytes - resident, per_row * 8)
    tb = max(8, min(max_tile_b, (budget // per_row) // 8 * 8))
    tb = min(tb, _round_up(B, 8))                    # tiny-batch: one sublane-aligned tile
    b_pad = _round_up(B, tb)
    if b_pad != B:
        x2d = jnp.pad(x2d, ((0, b_pad - B), (0, 0)))
    grid = (b_pad // tb,)

    # Explicit scoped-VMEM request derived from the actual footprint (+50% margin),
    # clamped to [32 MiB, 64 MiB] so it is valid on v5e/v6e/v7x.
    vmem_limit = int((resident + per_row * tb) * 1.5) + (2 << 20)
    vmem_limit = min(max(vmem_limit, 32 << 20), 64 << 20)

    def run(use_single_buffer):
        const_kw = {}
        if use_single_buffer and hasattr(pl, "Buffered"):
            const_kw = dict(pipeline_mode=pl.Buffered(1))
        in_specs = [
            pl.BlockSpec((tb, dim), lambda i: (i, 0)),                  # x, streamed over B
            pl.BlockSpec((1, dim), lambda i: (0, 0), **const_kw),       # gamma (resident)
            pl.BlockSpec((1, dim), lambda i: (0, 0), **const_kw),       # beta  (resident)
            pl.BlockSpec((dim, l_pad), lambda i: (0, 0), **const_kw),   # W^T   (resident)
            pl.BlockSpec((1, l_pad), lambda i: (0, 0), **const_kw),     # bias  (resident)
        ]
        return pl.pallas_call(
            functools.partial(_classifier_kernel, normalize=normalize),
            out_shape=jax.ShapeDtypeStruct((b_pad, l_pad), jnp.float32),  # f32 logits
            grid=grid,
            in_specs=in_specs,
            out_specs=pl.BlockSpec((tb, l_pad), lambda i: (i, 0)),
            compiler_params=pltpu.CompilerParams(
                dimension_semantics=("parallel",),   # megacore shard over batch tiles
                vmem_limit_bytes=vmem_limit),
        )(x2d, gamma2, beta2, wt, b2)

    if single_buffer_params:
        try:
            out = run(True)
        except Exception:      # pipeline_mode unsupported -> default double buffering
            out = run(False)
    else:
        out = run(False)

    return out[:B, :params["num_labels"]]


def linear_classifier(x_nchw, gamma, beta, weight, bias, *, normalize=True,
                      weight_dtype=jnp.bfloat16, **kwargs):
    """Convenience wrapper: prepares params then applies (prefer prepare+apply in loops)."""
    params = prepare_classifier_params(gamma, beta, weight, bias, weight_dtype=weight_dtype)
    return linear_classifier_apply(params, x_nchw, normalize=normalize, **kwargs)


def _reference(x_nchw, gamma, beta, weight, bias, normalize=True):
    B = x_nchw.shape[0]
    x = x_nchw.reshape(B, -1).astype(jnp.float32)
    mean = jnp.mean(x, axis=-1, keepdims=True)
    var = jnp.mean((x - mean) ** 2, axis=-1, keepdims=True)
    x = (x - mean) / jnp.sqrt(var + LN_EPS) * gamma + beta
    if normalize:
        n = jnp.maximum(jnp.linalg.norm(x, axis=-1, keepdims=True), L2_EPS)
        x = x / n
    return x @ weight.T + bias


if __name__ == "__main__":
    # Shapes implied by the module: x (B, C, H, W) flattened to dim = C*H*W.
    B, C, H, W = 2, 4, 16, 16
    dim = C * H * W            # 1024
    num_labels = 128           # small synthetic label count

    key = jax.random.PRNGKey(0)
    kx, kw = jax.random.split(key)

    x = jax.random.normal(kx, (B, C, H, W), dtype=jnp.float32)

    # Deterministic parameter init matching the module's __init__:
    #   LayerNorm: weight=1, bias=0;  Linear: weight ~ N(0, 0.01), bias = 0
    gamma = jnp.ones((dim,), dtype=jnp.float32)
    beta = jnp.zeros((dim,), dtype=jnp.float32)
    weight = 0.01 * jax.random.normal(kw, (num_labels, dim), dtype=jnp.float32)
    bias = jnp.zeros((num_labels,), dtype=jnp.float32)

    ref = _reference(x, gamma, beta, weight, bias)

    # f32 weight path (matches torch semantics; validation reference).
    params_f32 = prepare_classifier_params(gamma, beta, weight, bias, weight_dtype=None)
    out_f32 = jax.block_until_ready(linear_classifier_apply(params_f32, x, normalize=True))
    assert out_f32.shape == (B, num_labels)
    assert bool(jnp.max(jnp.abs(out_f32 - ref)) < 1e-4)

    # Default bf16-weight MXU path (prepare once, apply; halves weight HBM bytes).
    params_bf16 = prepare_classifier_params(gamma, beta, weight, bias,
                                            weight_dtype=jnp.bfloat16)
    out_bf16 = jax.block_until_ready(linear_classifier_apply(params_bf16, x, normalize=True))
    assert out_bf16.shape == (B, num_labels)
    assert bool(jnp.max(jnp.abs(out_bf16 - ref)) < 2e-3)

    print("KERNEL_OK")
</pallas_src>

<mosaic_0001>
module attributes {stable_mosaic.version = 11 : i64} {
  func.func @_classifier_kernel(%arg0: i32, %arg1: memref<8x1024xf32, #tpu.memory_space<vmem>>, %arg2: memref<1x1024xf32, #tpu.memory_space<vmem>>, %arg3: memref<1x1024xf32, #tpu.memory_space<vmem>>, %arg4: memref<1024x128xf32, #tpu.memory_space<vmem>>, %arg5: memref<1x128xf32, #tpu.memory_space<vmem>>, %arg6: memref<8x128xf32, #tpu.memory_space<vmem>>) attributes {dimension_semantics = [#tpu.dimension_semantics<parallel>], iteration_bounds = array<i64: 1>, scalar_prefetch = 0 : i64, scratch_operands = 0 : i64, tpu.core_type = #tpu.core_type<tc>, window_params = [{transform_indices = @transform_0, window_bounds = array<i64: 8, 1024>}, {pipeline_mode = #tpu.pipeline_mode<synchronous>, transform_indices = @transform_1, window_bounds = array<i64: 1, 1024>}, {pipeline_mode = #tpu.pipeline_mode<synchronous>, transform_indices = @transform_2, window_bounds = array<i64: 1, 1024>}, {pipeline_mode = #tpu.pipeline_mode<synchronous>, transform_indices = @transform_3, window_bounds = array<i64: 1024, 128>}, {pipeline_mode = #tpu.pipeline_mode<synchronous>, transform_indices = @transform_4, window_bounds = array<i64: 1, 128>}, {transform_indices = @transform_5, window_bounds = array<i64: 8, 128>}]} {
    %c0 = arith.constant 0 : index
    %c0_0 = arith.constant 0 : index
    %0 = vector.load %arg1[%c0, %c0_0] : memref<8x1024xf32, #tpu.memory_space<vmem>>, vector<8x1024xf32>
    %cst = arith.constant dense<0.000000e+00> : vector<8xf32>
    %1 = vector.multi_reduction <add>, %0, %cst [1] : vector<8x1024xf32> to vector<8xf32>
    %2 = vector.shape_cast %1 : vector<8xf32> to vector<8x1xf32>
    %cst_1 = arith.constant 1.024000e+03 : f32
    %3 = vector.broadcast %cst_1 : f32 to vector<8x1xf32>
    %4 = arith.divf %2, %3 : vector<8x1xf32>
    %5 = vector.broadcast %4 : vector<8x1xf32> to vector<8x1024xf32>
    %6 = arith.subf %0, %5 : vector<8x1024xf32>
    %7 = arith.mulf %6, %6 : vector<8x1024xf32>
    %cst_2 = arith.constant dense<0.000000e+00> : vector<8xf32>
    %8 = vector.multi_reduction <add>, %7, %cst_2 [1] : vector<8x1024xf32> to vector<8xf32>
    %9 = vector.shape_cast %8 : vector<8xf32> to vector<8x1xf32>
    %cst_3 = arith.constant 1.024000e+03 : f32
    %10 = vector.broadcast %cst_3 : f32 to vector<8x1xf32>
    %11 = arith.divf %9, %10 : vector<8x1xf32>
    %cst_4 = arith.constant 9.99999974E-6 : f32
    %12 = vector.broadcast %cst_4 : f32 to vector<8x1xf32>
    %13 = arith.addf %11, %12 : vector<8x1xf32>
    %14 = math.rsqrt %13 : vector<8x1xf32>
    %15 = vector.broadcast %14 : vector<8x1xf32> to vector<8x1024xf32>
    %16 = arith.mulf %6, %15 : vector<8x1024xf32>
    %c0_5 = arith.constant 0 : index
    %c0_6 = arith.constant 0 : index
    %17 = vector.load %arg2[%c0_5, %c0_6] : memref<1x1024xf32, #tpu.memory_space<vmem>>, vector<1x1024xf32>
    %18 = vector.broadcast %17 : vector<1x1024xf32> to vector<8x1024xf32>
    %19 = arith.mulf %16, %18 : vector<8x1024xf32>
    %c0_7 = arith.constant 0 : index
    %c0_8 = arith.constant 0 : index
    %20 = vector.load %arg3[%c0_7, %c0_8] : memref<1x1024xf32, #tpu.memory_space<vmem>>, vector<1x1024xf32>
    %21 = vector.broadcast %20 : vector<1x1024xf32> to vector<8x1024xf32>
    %22 = arith.addf %19, %21 : vector<8x1024xf32>
    %23 = arith.mulf %22, %22 : vector<8x1024xf32>
    %cst_9 = arith.constant dense<0.000000e+00> : vector<8xf32>
    %24 = vector.multi_reduction <add>, %23, %cst_9 [1] : vector<8x1024xf32> to vector<8xf32>
    %25 = vector.shape_cast %24 : vector<8xf32> to vector<8x1xf32>
    %cst_10 = arith.constant 1.000000e-24 : f32
    %26 = vector.broadcast %cst_10 : f32 to vector<8x1xf32>
    %27 = arith.maximumf %25, %26 : vector<8x1xf32>
    %28 = math.rsqrt %27 : vector<8x1xf32>
    %c0_11 = arith.constant 0 : index
    %c0_12 = arith.constant 0 : index
    %29 = vector.load %arg4[%c0_11, %c0_12] : memref<1024x128xf32, #tpu.memory_space<vmem>>, vector<1024x128xf32>
    %cst_13 = arith.constant dense<0.000000e+00> : vector<8x128xf32>
    %30 = tpu.matmul %22, %29, %cst_13 {dimension_numbers = #tpu.dot_dimension_numbers<[1], [0], [0], [1], [0, 0, 1, 1], [], []>} : vector<8x1024xf32>, vector<1024x128xf32>, vector<8x128xf32> -> vector<8x128xf32>
    %31 = vector.broadcast %28 : vector<8x1xf32> to vector<8x128xf32>
    %32 = arith.mulf %30, %31 : vector<8x128xf32>
    %c0_14 = arith.constant 0 : index
    %c0_15 = arith.constant 0 : index
    %33 = vector.load %arg5[%c0_14, %c0_15] : memref<1x128xf32, #tpu.memory_space<vmem>>, vector<1x128xf32>
    %34 = vector.broadcast %33 : vector<1x128xf32> to vector<8x128xf32>
    %35 = arith.addf %32, %34 : vector<8x128xf32>
    %c0_16 = arith.constant 0 : index
    %c0_17 = arith.constant 0 : index
    %36 = vector.load %arg6[%c0_16, %c0_17] : memref<8x128xf32, #tpu.memory_space<vmem>>, vector<8x128xf32>
    tpu.vector_store %arg6[%c0_16, %c0_17], %35 {strides = array<i32>} : memref<8x128xf32, #tpu.memory_space<vmem>>, vector<8x128xf32>,
    return
  }
  func.func @transform_0(%arg0: i32) -> (i32, i32) {
    %c0_i32 = arith.constant 0 : i32
    %c0_i32_0 = arith.constant 0 : i32
    return %arg0, %c0_i32 : i32, i32
  }
  func.func @transform_1(%arg0: i32) -> (i32, i32) {
    %c0_i32 = arith.constant 0 : i32
    %c0_i32_0 = arith.constant 0 : i32
    %c0_i32_1 = arith.constant 0 : i32
    return %c0_i32, %c0_i32_0 : i32, i32
  }
  func.func @transform_2(%arg0: i32) -> (i32, i32) {
    %c0_i32 = arith.constant 0 : i32
    %c0_i32_0 = arith.constant 0 : i32
    %c0_i32_1 = arith.constant 0 : i32
    return %c0_i32, %c0_i32_0 : i32, i32
  }
  func.func @transform_3(%arg0: i32) -> (i32, i32) {
    %c0_i32 = arith.constant 0 : i32
    %c0_i32_0 = arith.constant 0 : i32
    %c0_i32_1 = arith.constant 0 : i32
    return %c0_i32, %c0_i32_0 : i32, i32
  }
  func.func @transform_4(%arg0: i32) -> (i32, i32) {
    %c0_i32 = arith.constant 0 : i32
    %c0_i32_0 = arith.constant 0 : i32
    %c0_i32_1 = arith.constant 0 : i32
    return %c0_i32, %c0_i32_0 : i32, i32
  }
  func.func @transform_5(%arg0: i32) -> (i32, i32) {
    %c0_i32 = arith.constant 0 : i32
    %c0_i32_0 = arith.constant 0 : i32
    return %arg0, %c0_i32 : i32, i32
  }
}

module attributes {stable_mosaic.version = 11 : i64} {
  func.func @_classifier_kernel(%arg0: i32, %arg1: memref<8x1024xf32, #tpu.memory_space<vmem>>, %arg2: memref<1x1024xf32, #tpu.memory_space<vmem>>, %arg3: memref<1x1024xf32, #tpu.memory_space<vmem>>, %arg4: memref<1024x128xf32, #tpu.memory_space<vmem>>, %arg5: memref<1x128xf32, #tpu.memory_space<vmem>>, %arg6: memref<8x128xf32, #tpu.memory_space<vmem>>) attributes {dimension_semantics = [#tpu.dimension_semantics<parallel>], iteration_bounds = array<i64: 1>, scalar_prefetch = 0 : i64, scratch_operands = 0 : i64, tpu.core_type = #tpu.core_type<tc>, window_params = [{transform_indices = @transform_0, window_bounds = array<i64: 8, 1024>}, {pipeline_mode = #tpu.pipeline_mode<synchronous>, transform_indices = @transform_1, window_bounds = array<i64: 1, 1024>}, {pipeline_mode = #tpu.pipeline_mode<synchronous>, transform_indices = @transform_2, window_bounds = array<i64: 1, 1024>}, {pipeline_mode = #tpu.pipeline_mode<synchronous>, transform_indices = @transform_3, window_bounds = array<i64: 1024, 128>}, {pipeline_mode = #tpu.pipeline_mode<synchronous>, transform_indices = @transform_4, window_bounds = array<i64: 1, 128>}, {transform_indices = @transform_5, window_bounds = array<i64: 8, 128>}]} {
    %c0 = arith.constant 0 : index
    %c0_0 = arith.constant 0 : index
    %0 = vector.load %arg1[%c0, %c0_0] : memref<8x1024xf32, #tpu.memory_space<vmem>>, vector<8x1024xf32>
    %cst = arith.constant dense<0.000000e+00> : vector<8xf32>
    %1 = vector.multi_reduction <add>, %0, %cst [1] : vector<8x1024xf32> to vector<8xf32>
    %2 = vector.shape_cast %1 : vector<8xf32> to vector<8x1xf32>
    %cst_1 = arith.constant 1.024000e+03 : f32
    %3 = vector.broadcast %cst_1 : f32 to vector<8x1xf32>
    %4 = arith.divf %2, %3 : vector<8x1xf32>
    %5 = vector.broadcast %4 : vector<8x1xf32> to vector<8x1024xf32>
    %6 = arith.subf %0, %5 : vector<8x1024xf32>
    %7 = arith.mulf %6, %6 : vector<8x1024xf32>
    %cst_2 = arith.constant dense<0.000000e+00> : vector<8xf32>
    %8 = vector.multi_reduction <add>, %7, %cst_2 [1] : vector<8x1024xf32> to vector<8xf32>
    %9 = vector.shape_cast %8 : vector<8xf32> to vector<8x1xf32>
    %cst_3 = arith.constant 1.024000e+03 : f32
    %10 = vector.broadcast %cst_3 : f32 to vector<8x1xf32>
    %11 = arith.divf %9, %10 : vector<8x1xf32>
    %cst_4 = arith.constant 9.99999974E-6 : f32
    %12 = vector.broadcast %cst_4 : f32 to vector<8x1xf32>
    %13 = arith.addf %11, %12 : vector<8x1xf32>
    %14 = math.rsqrt %13 : vector<8x1xf32>
    %15 = vector.broadcast %14 : vector<8x1xf32> to vector<8x1024xf32>
    %16 = arith.mulf %6, %15 : vector<8x1024xf32>
    %c0_5 = arith.constant 0 : index
    %c0_6 = arith.constant 0 : index
    %17 = vector.load %arg2[%c0_5, %c0_6] : memref<1x1024xf32, #tpu.memory_space<vmem>>, vector<1x1024xf32>
    %18 = vector.broadcast %17 : vector<1x1024xf32> to vector<8x1024xf32>
    %19 = arith.mulf %16, %18 : vector<8x1024xf32>
    %c0_7 = arith.constant 0 : index
    %c0_8 = arith.constant 0 : index
    %20 = vector.load %arg3[%c0_7, %c0_8] : memref<1x1024xf32, #tpu.memory_space<vmem>>, vector<1x1024xf32>
    %21 = vector.broadcast %20 : vector<1x1024xf32> to vector<8x1024xf32>
    %22 = arith.addf %19, %21 : vector<8x1024xf32>
    %23 = arith.mulf %22, %22 : vector<8x1024xf32>
    %cst_9 = arith.constant dense<0.000000e+00> : vector<8xf32>
    %24 = vector.multi_reduction <add>, %23, %cst_9 [1] : vector<8x1024xf32> to vector<8xf32>
    %25 = vector.shape_cast %24 : vector<8xf32> to vector<8x1xf32>
    %cst_10 = arith.constant 1.000000e-24 : f32
    %26 = vector.broadcast %cst_10 : f32 to vector<8x1xf32>
    %27 = arith.maximumf %25, %26 : vector<8x1xf32>
    %28 = math.rsqrt %27 : vector<8x1xf32>
    %c0_11 = arith.constant 0 : index
    %c0_12 = arith.constant 0 : index
    %29 = vector.load %arg4[%c0_11, %c0_12] : memref<1024x128xf32, #tpu.memory_space<vmem>>, vector<1024x128xf32>
    %cst_13 = arith.constant dense<0.000000e+00> : vector<8x128xf32>
    %30 = tpu.matmul %22, %29, %cst_13 {dimension_numbers = #tpu.dot_dimension_numbers<[1], [0], [0], [1], [0, 0, 1, 1], [], []>} : vector<8x1024xf32>, vector<1024x128xf32>, vector<8x128xf32> -> vector<8x128xf32>
    %31 = vector.broadcast %28 : vector<8x1xf32> to vector<8x128xf32>
    %32 = arith.mulf %30, %31 : vector<8x128xf32>
    %c0_14 = arith.constant 0 : index
    %c0_15 = arith.constant 0 : index
    %33 = vector.load %arg5[%c0_14, %c0_15] : memref<1x128xf32, #tpu.memory_space<vmem>>, vector<1x128xf32>
    %34 = vector.broadcast %33 : vector<1x128xf32> to vector<8x128xf32>
    %35 = arith.addf %32, %34 : vector<8x128xf32>
    %c0_16 = arith.constant 0 : index
    %c0_17 = arith.constant 0 : index
    %36 = vector.load %arg6[%c0_16, %c0_17] : memref<8x128xf32, #tpu.memory_space<vmem>>, vector<8x128xf32>
    tpu.vector_store %arg6[%c0_16, %c0_17], %35 {strides = array<i32>} : memref<8x128xf32, #tpu.memory_space<vmem>>, vector<8x128xf32>,
    return
  }
  func.func @transform_0(%arg0: i32) -> (i32, i32) {
    %c0_i32 = arith.constant 0 : i32
    %c0_i32_0 = arith.constant 0 : i32
    return %arg0, %c0_i32 : i32, i32
  }
  func.func @transform_1(%arg0: i32) -> (i32, i32) {
    %c0_i32 = arith.constant 0 : i32
    %c0_i32_0 = arith.constant 0 : i32
    %c0_i32_1 = arith.constant 0 : i32
    return %c0_i32, %c0_i32_0 : i32, i32
  }
  func.func @transform_2(%arg0: i32) -> (i32, i32) {
    %c0_i32 = arith.constant 0 : i32
    %c0_i32_0 = arith.constant 0 : i32
    %c0_i32_1 = arith.constant 0 : i32
    return %c0_i32, %c0_i32_0 : i32, i32
  }
  func.func @transform_3(%arg0: i32) -> (i32, i32) {
    %c0_i32 = arith.constant 0 : i32
    %c0_i32_0 = arith.constant 0 : i32
    %c0_i32_1 = arith.constant 0 : i32
    return %c0_i32, %c0_i32_0 : i32, i32
  }
  func.func @transform_4(%arg0: i32) -> (i32, i32) {
    %c0_i32 = arith.constant 0 : i32
    %c0_i32_0 = arith.constant 0 : i32
    %c0_i32_1 = arith.constant 0 : i32
    return %c0_i32, %c0_i32_0 : i32, i32
  }
  func.func @transform_5(%arg0: i32) -> (i32, i32) {
    %c0_i32 = arith.constant 0 : i32
    %c0_i32_0 = arith.constant 0 : i32
    return %arg0, %c0_i32 : i32, i32
  }
}

</mosaic_0001>

<bundles_post_ra>
// kernel: tpu_custom_call.1
= control target key start
LH: loop header
LB: loop body
LE: loop exit
PB: predicated region body
PF: predicated region fallthrough
CT: control target
= control target key end

     0   :  { %10 = vsyncpa [#allocation3], 0  ;;  %s817_s0 = inlined_call_operand.hbm [shape: f32[8,1024], index: 0, kind: input, shape index: {}]   ;;  %s818_s1 = inlined_call_operand.hbm [shape: f32[1,1024], index: 1, kind: input, shape index: {}]   ;;  %s819_s2 = inlined_call_operand.hbm [shape: f32[1,1024], index: 2, kind: input, shape index: {}]   ;;  %s820_s3 = inlined_call_operand.hbm [shape: f32[1024,128], index: 3, kind: input, shape index: {}]   ;;  %s821_s4 = inlined_call_operand.vmem [shape: f32[1,128], index: 4, kind: input, shape index: {}]   ;;  %s822_s5 = inlined_call_operand.hbm [shape: f32[8,128], index: 5, kind: output, shape index: {}]  }
   0x1   :  { %11 = vsyncpa [#allocation6], 0 }
   0x2   :  { %12 = vsyncpa [#allocation9], 0  ;;  %s30_s20 = sshll.u32 %s818_s1, 4  ;;  %s31_s20 = int_to_ptr.hbm [resolvable:$true] %s30_s20 }
   0x3   :  { %13 = vsyncpa [#allocation4], 0  ;;  %s685_s21 = smov [#allocation5]   ;;  %s19_s25 = sshll.u32 %s817_s0, 4  ;;  %s20_s25 = int_to_ptr.hbm [resolvable:$true] %s19_s25 }
   0x4   :  { %s32_s22 = sshll.u32 %s685_s21, 4  ;;  %s686_s26 = smov [#allocation2]   ;;  %s33_s22 = int_to_ptr.vmem [resolvable:$true] %s32_s22 }
   0x5   :  { %35 = dma.hbm_to_vmem [thread:$0]  %s31_s20, 128, %s33_s22, [#allocation6]  }
   0x6   :  { %s21_s27 = sshll.u32 %s686_s26, 4  ;;  %s41_s30 = sshll.u32 %s819_s2, 4  ;;  %s22_s27 = int_to_ptr.vmem [resolvable:$true] %s21_s27  ;;  %s42_s30 = int_to_ptr.hbm [resolvable:$true] %s41_s30 }
   0x7   :  { %24 = dma.hbm_to_vmem [thread:$0]  %s20_s25, 1024, %s22_s27, [#allocation3]  }
   0x8   :  { %s51_s7 = sshll.u32 %s820_s3, 4  ;;  %s687_s8 = smov [#allocation7]   ;;  %s52_s7 = int_to_ptr.hbm [resolvable:$true] %s51_s7 }
   0x9   :  { %s43_s9 = sshll.u32 %s687_s8, 4  ;;  %s688_s0 = smov [#allocation8]   ;;  %s44_s9 = int_to_ptr.vmem [resolvable:$true] %s43_s9 }
   0xa   :  { %46 = dma.hbm_to_vmem [thread:$0]  %s42_s30, 128, %s44_s9, [#allocation6]  }
   0xb   :  { %s53_s10 = sshll.u32 %s688_s0, 4  ;;  %s689_s11 = smov 128   ;;  %s54_s10 = int_to_ptr.vmem [resolvable:$true] %s53_s10 }
   0xc   :  { %s690_s12 = smov 8  }
   0xd   :  { %59 = dma.hbm_to_vmem [thread:$0]  %s52_s7, 16384, %s54_s10, [#allocation9], %s689_s11, %s689_s11, %s690_s12  }
   0xe   :  { %677 = dma.done.wait [#allocation3], 1024  }
   0xf   :  { %678 = vsyncadd [#allocation3], 4294966272 }
  0x10   :  { %679 = dma.done.wait [#allocation6], 256  }
  0x11   :  { %680 = vsyncadd [#allocation6], 4294967040 }
  0x12   :  { %681 = dma.done.wait [#allocation9], 16384  }
  0x13   :  { %682 = vsyncadd [#allocation9], 4294950912  ;;  %v735_v0 = vld [vmem:[#allocation2] sm:$0xff]  ;;  %v737_v1 = vld [vmem:[#allocation2 + $0x8] sm:$0xff]  ;;  %v691_v15 = vmov 1024.0   ;;  %s692_s13 = smov [#allocation10]  }
  0x14   :  { %v739_v2 = vld [vmem:[#allocation2 + $0x10] sm:$0xff]  ;;  %v86_v3 = vadd.f32 %v737_v1, %v735_v0  ;;  %v743_v4 = vld [vmem:[#allocation2 + $0x18] sm:$0xff]  ;;  %v746_v6 = vld [vmem:[#allocation2 + $0x20] sm:$0xff]  ;;  %551 = vrcp.f32 %v691_v15  ;;  %s528_s14 = sshll.u32 %s692_s13, 4  ;;  %s530_s17 = sshll.u32 %s822_s5, 4  ;;  %s529_s14 = int_to_ptr.vmem [resolvable:$true] %s528_s14  ;;  %s531_s17 = int_to_ptr.hbm [resolvable:$true] %s530_s17 }
  0x15   :  { %v749_v8 = vld [vmem:[#allocation2 + $0x28] sm:$0xff]  ;;  %v752_v10 = vld [vmem:[#allocation2 + $0x30] sm:$0xff]  ;;  %v755_v12 = vld [vmem:[#allocation2 + $0x38] sm:$0xff] }
  0x16   :  { %v87_v5 = vadd.f32 %v86_v3, %v739_v2  ;;  %v243_v19 = vld [vmem:[#allocation8 + $0x78] sm:$0xff]  ;;  %v242_v24 = vld [vmem:[#allocation8 + $0x70] sm:$0xff]  ;;  %v241_v28 = vld [vmem:[#allocation8 + $0x68] sm:$0xff] }
  0x17   :  { %v259_v20 = vld [vmem:[#allocation8 + $0xf8] sm:$0xff]  ;;  %356 = vmatpush.msra.mxu0 %v243_v19  ;;  %v258_v25 = vld [vmem:[#allocation8 + $0xf0] sm:$0xff]  ;;  %v257_v29 = vld [vmem:[#allocation8 + $0xe8] sm:$0xff] }
  0x18   :  { %v88_v7 = vadd.f32 %v87_v5, %v743_v4  ;;  %v275_v21 = vld [vmem:[#allocation8 + $0x178] sm:$0xff]  ;;  %376 = vmatpush.msra.mxu1 %v259_v20  ;;  %v274_v26 = vld [vmem:[#allocation8 + $0x170] sm:$0xff]  ;;  %v273_v30 = vld [vmem:[#allocation8 + $0x168] sm:$0xff] }
  0x19   :  { %v291_v23 = vld [vmem:[#allocation8 + $0x1f8] sm:$0xff]  ;;  %396 = vmatpush.msra.mxu2 %v275_v21  ;;  %v290_v27 = vld [vmem:[#allocation8 + $0x1f0] sm:$0xff]  ;;  %357 = vmatpush.msra.mxu0 %v242_v24  ;;  %v289_v31 = vld [vmem:[#allocation8 + $0x1e8] sm:$0xff] }
  0x1a   :  { %v89_v9 = vadd.f32 %v88_v7, %v746_v6  ;;  %v552_v16 = vpop.eup %551  ;;  %416 = vmatpush.msra.mxu3 %v291_v23  ;;  %377 = vmatpush.msra.mxu1 %v258_v25  ;;  %v240_v32 = vld [vmem:[#allocation8 + $0x60] sm:$0xff]  ;;  %v239_v37 = vld [vmem:[#allocation8 + $0x58] sm:$0xff]  ;;  %v238_v41 = vld [vmem:[#allocation8 + $0x50] sm:$0xff] }
  0x1b   :  { %v96_v17 = vmul.f32 1024.0, %v552_v16  ;;  %397 = vmatpush.msra.mxu2 %v274_v26  ;;  %v256_v33 = vld [vmem:[#allocation8 + $0xe0] sm:$0xff]  ;;  %358 = vmatpush.msra.mxu0 %v241_v28  ;;  %vm100_vm0 = vweird.f32 %v552_v16  ;;  %v255_v38 = vld [vmem:[#allocation8 + $0xd8] sm:$0xff]  ;;  %v254_v42 = vld [vmem:[#allocation8 + $0xd0] sm:$0xff] }
  0x1c   :  { %v90_v11 = vadd.f32 %v89_v9, %v749_v8  ;;  %417 = vmatpush.msra.mxu3 %v290_v27  ;;  %378 = vmatpush.msra.mxu1 %v257_v29  ;;  %v272_v35 = vld [vmem:[#allocation8 + $0x160] sm:$0xff]  ;;  %v271_v39 = vld [vmem:[#allocation8 + $0x158] sm:$0xff]  ;;  %v270_v44 = vld [vmem:[#allocation8 + $0x150] sm:$0xff] }
  0x1d   :  { %v97_v18 = vsub.f32 1.0, %v96_v17  ;;  %v288_v36 = vld [vmem:[#allocation8 + $0x1e0] sm:$0xff]  ;;  %398 = vmatpush.msra.mxu2 %v273_v30  ;;  %359 = vmatpush.msra.mxu0 %v240_v32  ;;  %v287_v40 = vld [vmem:[#allocation8 + $0x1d8] sm:$0xff]  ;;  %v286_v45 = vld [vmem:[#allocation8 + $0x1d0] sm:$0xff] }
  0x1e   :  { %v91_v13 = vadd.f32 %v90_v11, %v752_v10  ;;  %418 = vmatpush.msra.mxu3 %v289_v31  ;;  %379 = vmatpush.msra.mxu1 %v256_v33  ;;  %v237_v46 = vld [vmem:[#allocation8 + $0x48] sm:$0xff]  ;;  %v236_v52 = vld [vmem:[#allocation8 + $0x40] sm:$0xff]  ;;  %v235_v62 = vld [vmem:[#allocation8 + $0x38] sm:$0xff] }
  0x1f   :  { %v98_v22 = vmul.f32 %v552_v16, %v97_v18  ;;  %399 = vmatpush.msra.mxu2 %v272_v35  ;;  %360 = vmatpush.msra.mxu0 %v239_v37  ;;  %v253_v47 = vld [vmem:[#allocation8 + $0xc8] sm:$0xff]  ;;  %v252_v56 = vld [vmem:[#allocation8 + $0xc0] sm:$0xff]  ;;  %v251_v63 = vld [vmem:[#allocation8 + $0xb8] sm:$0xff] }
  0x20   :  { %v92_v14 = vadd.f32 %v91_v13, %v755_v12  ;;  %419 = vmatpush.msra.mxu3 %v288_v36  ;;  %380 = vmatpush.msra.mxu1 %v255_v38  ;;  %v269_v49 = vld [vmem:[#allocation8 + $0x148] sm:$0xff]  ;;  %v268_v57 = vld [vmem:[#allocation8 + $0x140] sm:$0xff]  ;;  %v234_v5 = vld [vmem:[#allocation8 + $0x30] sm:$0xff] }
  0x21   :  { %v99_v34 = vadd.f32 %v552_v16, %v98_v22  ;;  %400 = vmatpush.msra.mxu2 %v271_v39  ;;  %361 = vmatpush.msra.mxu0 %v238_v41  ;;  %v285_v51 = vld [vmem:[#allocation8 + $0x1c8] sm:$0xff]  ;;  %v284_v58 = vld [vmem:[#allocation8 + $0x1c0] sm:$0xff]  ;;  %v250_v7 = vld [vmem:[#allocation8 + $0xb0] sm:$0xff] }
  0x22   :  { %93 = vadd.xlane.f32.xlu0 %v92_v14  ;;  %420 = vmatpush.msra.mxu3 %v287_v40  ;;  %v266_v9 = vld [vmem:[#allocation8 + $0x130] sm:$0xff]  ;;  %v233_v15 = vld [vmem:[#allocation8 + $0x28] sm:$0xff]  ;;  %v232_v21 = vld [vmem:[#allocation8 + $0x20] sm:$0xff] }
  0x23   :  { %v759_v43 = vsel %vm100_vm0, %v552_v16, %v99_v34  ;;  %381 = vmatpush.msra.mxu1 %v254_v42  ;;  %401 = vmatpush.msra.mxu2 %v270_v44  ;;  %v282_v11 = vld [vmem:[#allocation8 + $0x1b0] sm:$0xff]  ;;  %v249_v16 = vld [vmem:[#allocation8 + $0xa8] sm:$0xff]  ;;  %v248_v22 = vld [vmem:[#allocation8 + $0xa0] sm:$0xff] }
  0x24   :  { %421 = vmatpush.msra.mxu3 %v286_v45  ;;  %362 = vmatpush.msra.mxu0 %v237_v46  ;;  %v265_v17 = vld [vmem:[#allocation8 + $0x128] sm:$0xff]  ;;  %v264_v23 = vld [vmem:[#allocation8 + $0x120] sm:$0xff]  ;;  %v231_v27 = vld [vmem:[#allocation8 + $0x18] sm:$0xff] }
  0x25   :  { %382 = vmatpush.msra.mxu1 %v253_v47  ;;  %402 = vmatpush.msra.mxu2 %v269_v49  ;;  %v281_v18 = vld [vmem:[#allocation8 + $0x1a8] sm:$0xff]  ;;  %v280_v24 = vld [vmem:[#allocation8 + $0x1a0] sm:$0xff]  ;;  %v247_v28 = vld [vmem:[#allocation8 + $0x98] sm:$0xff] }
  0x26   :  { %422 = vmatpush.msra.mxu3 %v285_v51  ;;  %363 = vmatpush.msra.mxu0 %v236_v52  ;;  %v263_v29 = vld [vmem:[#allocation8 + $0x118] sm:$0xff]  ;;  %v230_v35 = vld [vmem:[#allocation8 + $0x10] sm:$0xff]  ;;  %v229_v39 = vld [vmem:[#allocation8 + $0x8] sm:$0xff] }
  0x27   :  { %383 = vmatpush.msra.mxu1 %v252_v56  ;;  %403 = vmatpush.msra.mxu2 %v268_v57  ;;  %v279_v30 = vld [vmem:[#allocation8 + $0x198] sm:$0xff]  ;;  %v246_v36 = vld [vmem:[#allocation8 + $0x90] sm:$0xff]  ;;  %v245_v40 = vld [vmem:[#allocation8 + $0x88] sm:$0xff] }
  0x28   :  { %423 = vmatpush.msra.mxu3 %v284_v58  ;;  %364 = vmatpush.msra.mxu0 %v235_v62  ;;  %v262_v37 = vld [vmem:[#allocation8 + $0x110] sm:$0xff]  ;;  %v261_v41 = vld [vmem:[#allocation8 + $0x108] sm:$0xff]  ;;  %v228_v44 = vld [vmem:[#allocation8] sm:$0xff] }
  0x29   :  { %384 = vmatpush.msra.mxu1 %v251_v63  ;;  %v278_v38 = vld [vmem:[#allocation8 + $0x190] sm:$0xff]  ;;  %v277_v42 = vld [vmem:[#allocation8 + $0x188] sm:$0xff]  ;;  %v244_v45 = vld [vmem:[#allocation8 + $0x80] sm:$0xff] }
  0x2a   :  { %365 = vmatpush.msra.mxu0 %v234_v5  ;;  %v260_v46 = vld [vmem:[#allocation8 + $0x100] sm:$0xff]  ;;  %v323_v49 = vld [vmem:[#allocation8 + $0x2f8] sm:$0xff]  ;;  %v306_v52 = vld [vmem:[#allocation8 + $0x270] sm:$0xff] }
  0x2b   :  { %385 = vmatpush.msra.mxu1 %v250_v7  ;;  %v276_v47 = vld [vmem:[#allocation8 + $0x180] sm:$0xff]  ;;  %v355_v51 = vld [vmem:[#allocation8 + $0x3f8] sm:$0xff]  ;;  %v322_v56 = vld [vmem:[#allocation8 + $0x2f0] sm:$0xff] }
  0x2c   :  { %366 = vmatpush.msra.mxu0 %v233_v15  ;;  %v338_v57 = vld [vmem:[#allocation8 + $0x370] sm:$0xff]  ;;  %v337_v62 = vld [vmem:[#allocation8 + $0x368] sm:$0xff]  ;;  %v303_v5 = vld [vmem:[#allocation8 + $0x258] sm:$0xff] }
  0x2d   :  { %386 = vmatpush.msra.mxu1 %v249_v16  ;;  %v354_v58 = vld [vmem:[#allocation8 + $0x3f0] sm:$0xff]  ;;  %v353_v63 = vld [vmem:[#allocation8 + $0x3e8] sm:$0xff]  ;;  %v319_v7 = vld [vmem:[#allocation8 + $0x2d8] sm:$0xff] }
  0x2e   :  { %367 = vmatpush.msra.mxu0 %v232_v21  ;;  %v334_v15 = vld [vmem:[#allocation8 + $0x350] sm:$0xff]  ;;  %v300_v21 = vld [vmem:[#allocation8 + $0x240] sm:$0xff] }
  0x2f   :  { %387 = vmatpush.msra.mxu1 %v248_v22  ;;  %v350_v16 = vld [vmem:[#allocation8 + $0x3d0] sm:$0xff]  ;;  %v316_v22 = vld [vmem:[#allocation8 + $0x2c0] sm:$0xff] }
  0x30   :  { %368 = vmatpush.msra.mxu0 %v231_v27  ;;  %v331_v27 = vld [vmem:[#allocation8 + $0x338] sm:$0xff] }
  0x31   :  { %388 = vmatpush.msra.mxu1 %v247_v28  ;;  %v347_v28 = vld [vmem:[#allocation8 + $0x3b8] sm:$0xff] }
  0x32   :  { %369 = vmatpush.msra.mxu0 %v230_v35  ;;  %v345_v35 = vld [vmem:[#allocation8 + $0x3a8] sm:$0xff] }
  0x33   :  { %389 = vmatpush.msra.mxu1 %v246_v36  ;;  %v296_v36 = vld [vmem:[#allocation8 + $0x220] sm:$0xff] }
  0x34   :  { %370 = vmatpush.msra.mxu0 %v229_v39  ;;  %v344_v39 = vld [vmem:[#allocation8 + $0x3a0] sm:$0xff] }
  0x35   :  { %390 = vmatpush.msra.mxu1 %v245_v40  ;;  %v295_v40 = vld [vmem:[#allocation8 + $0x218] sm:$0xff] }
  0x36   :  { %371 = vmatpush.msra.mxu0 %v228_v44  ;;  %v343_v44 = vld [vmem:[#allocation8 + $0x398] sm:$0xff] }
  0x37   :  { %391 = vmatpush.msra.mxu1 %v244_v45 }
  0x39   :  { %456 = vmatpush.msrb.mxu1 %v323_v49 }
  0x3b   :  { %457 = vmatpush.msrb.mxu1 %v322_v56  ;;  %v325_v56 = vld [vmem:[#allocation8 + $0x308] sm:$0xff] }
  0x95   :  { %v94_v48 = vpop.xlane.xlu0 %93 }
  0x96   :  { %v102_v50 = vmul.f32 %v759_v43, %v94_v48  ;;  %v307_v48 = vld [vmem:[#allocation8 + $0x278] sm:$0xff] }
  0x97   :  { %436 = vmatpush.msrb.mxu0 %v307_v48  ;;  %v326_v48 = vld [vmem:[#allocation8 + $0x310] sm:$0xff] }
  0x98   :  { %v763_v53 = vsub.f32 %v735_v0, %v102_v50  ;;  %v766_v54 = vsub.f32 %v737_v1, %v102_v50  ;;  %v769_v55 = vsub.f32 %v739_v2, %v102_v50  ;;  %v772_v59 = vsub.f32 %v743_v4, %v102_v50  ;;  %v267_v0 = vld [vmem:[#allocation8 + $0x138] sm:$0xff] }
  0x99   :  { %v283_v1 = vld [vmem:[#allocation8 + $0x1b8] sm:$0xff]  ;;  %v779_v2 = vsub.f32 %v746_v6, %v102_v50  ;;  %v784_v13 = vsub.f32 %v749_v8, %v102_v50  ;;  %404 = vmatpush.msra.mxu2 %v267_v0  ;;  %v789_v19 = vsub.f32 %v752_v10, %v102_v50  ;;  %v794_v25 = vsub.f32 %v755_v12, %v102_v50  ;;  %v304_v0 = vld [vmem:[#allocation8 + $0x260] sm:$0xff] }
  0x9a   :  { %v111_v60 = vmul.f32 %v763_v53, %v763_v53  ;;  %v112_v61 = vmul.f32 %v766_v54, %v766_v54  ;;  %v113_v3 = vmul.f32 %v769_v55, %v769_v55  ;;  %v114_v14 = vmul.f32 %v772_v59, %v772_v59  ;;  %424 = vmatpush.msra.mxu3 %v283_v1  ;;  %v339_v50 = vld [vmem:[#allocation8 + $0x378] sm:$0xff]  ;;  %v320_v1 = vld [vmem:[#allocation8 + $0x2e0] sm:$0xff] }
  0x9b   :  { %v115_v20 = vmul.f32 %v779_v2, %v779_v2  ;;  %405 = vmatpush.msra.mxu2 %v266_v9  ;;  %v116_v26 = vmul.f32 %v784_v13, %v784_v13  ;;  %v117_v31 = vmul.f32 %v789_v19, %v789_v19  ;;  %v118_v12 = vmul.f32 %v794_v25, %v794_v25  ;;  %v335_v9 = vld [vmem:[#allocation8 + $0x358] sm:$0xff] }
  0x9c   :  { %v119_v4 = vadd.f32 %v112_v61, %v111_v60  ;;  %425 = vmatpush.msra.mxu3 %v282_v11  ;;  %437 = vmatpush.msrb.mxu0 %v306_v52  ;;  %v305_v60 = vld [vmem:[#allocation8 + $0x268] sm:$0xff]  ;;  %v351_v11 = vld [vmem:[#allocation8 + $0x3d8] sm:$0xff] }
  0x9d   :  { %406 = vmatpush.msra.mxu2 %v265_v17  ;;  %v321_v61 = vld [vmem:[#allocation8 + $0x2e8] sm:$0xff] }
  0x9e   :  { %v120_v6 = vadd.f32 %v119_v4, %v113_v3  ;;  %426 = vmatpush.msra.mxu3 %v281_v18  ;;  %438 = vmatpush.msrb.mxu0 %v305_v60  ;;  %v336_v3 = vld [vmem:[#allocation8 + $0x360] sm:$0xff]  ;;  %v301_v17 = vld [vmem:[#allocation8 + $0x248] sm:$0xff] }
  0x9f   :  { %407 = vmatpush.msra.mxu2 %v264_v23  ;;  %458 = vmatpush.msrb.mxu1 %v321_v61  ;;  %v352_v4 = vld [vmem:[#allocation8 + $0x3e0] sm:$0xff]  ;;  %v317_v18 = vld [vmem:[#allocation8 + $0x2c8] sm:$0xff] }
  0xa0   :  { %v121_v8 = vadd.f32 %v120_v6, %v114_v14  ;;  %427 = vmatpush.msra.mxu3 %v280_v24  ;;  %439 = vmatpush.msrb.mxu0 %v304_v0  ;;  %v302_v14 = vld [vmem:[#allocation8 + $0x250] sm:$0xff]  ;;  %v332_v23 = vld [vmem:[#allocation8 + $0x340] sm:$0xff]  ;;  %v309_v52 = vld [vmem:[#allocation8 + $0x288] sm:$0xff] }
  0xa1   :  { %408 = vmatpush.msra.mxu2 %v263_v29  ;;  %459 = vmatpush.msrb.mxu1 %v320_v1  ;;  %v318_v6 = vld [vmem:[#allocation8 + $0x2d0] sm:$0xff]  ;;  %v348_v24 = vld [vmem:[#allocation8 + $0x3c0] sm:$0xff] }
  0xa2   :  { %v122_v10 = vadd.f32 %v121_v8, %v115_v20  ;;  %428 = vmatpush.msra.mxu3 %v279_v30  ;;  %440 = vmatpush.msrb.mxu0 %v303_v5  ;;  %v333_v20 = vld [vmem:[#allocation8 + $0x348] sm:$0xff]  ;;  %v298_v29 = vld [vmem:[#allocation8 + $0x230] sm:$0xff]  ;;  %v292_v60 = vld [vmem:[#allocation8 + $0x200] sm:$0xff] }
  0xa3   :  { %409 = vmatpush.msra.mxu2 %v262_v37  ;;  %460 = vmatpush.msrb.mxu1 %v319_v7  ;;  %v349_v8 = vld [vmem:[#allocation8 + $0x3c8] sm:$0xff]  ;;  %v314_v30 = vld [vmem:[#allocation8 + $0x2b0] sm:$0xff]  ;;  %v312_v37 = vld [vmem:[#allocation8 + $0x2a0] sm:$0xff] }
  0xa4   :  { %v123_v32 = vadd.f32 %v122_v10, %v116_v26  ;;  %429 = vmatpush.msra.mxu3 %v278_v38  ;;  %441 = vmatpush.msrb.mxu0 %v302_v14  ;;  %v299_v26 = vld [vmem:[#allocation8 + $0x238] sm:$0xff]  ;;  %v328_v38 = vld [vmem:[#allocation8 + $0x320] sm:$0xff] }
  0xa5   :  { %410 = vmatpush.msra.mxu2 %v261_v41  ;;  %461 = vmatpush.msrb.mxu1 %v318_v6  ;;  %v315_v10 = vld [vmem:[#allocation8 + $0x2b8] sm:$0xff]  ;;  %v308_v61 = vld [vmem:[#allocation8 + $0x280] sm:$0xff] }
  0xa6   :  { %v124_v33 = vadd.f32 %v123_v32, %v117_v31  ;;  %430 = vmatpush.msra.mxu3 %v277_v42  ;;  %442 = vmatpush.msrb.mxu0 %v301_v17  ;;  %v330_v31 = vld [vmem:[#allocation8 + $0x330] sm:$0xff]  ;;  %v311_v41 = vld [vmem:[#allocation8 + $0x298] sm:$0xff] }
  0xa7   :  { %411 = vmatpush.msra.mxu2 %v260_v46  ;;  %462 = vmatpush.msrb.mxu1 %v317_v18  ;;  %v346_v32 = vld [vmem:[#allocation8 + $0x3b0] sm:$0xff]  ;;  %v327_v42 = vld [vmem:[#allocation8 + $0x318] sm:$0xff] }
  0xa8   :  { %v125_v34 = vadd.f32 %v124_v33, %v118_v12  ;;  %431 = vmatpush.msra.mxu3 %v276_v47  ;;  %443 = vmatpush.msrb.mxu0 %v300_v21  ;;  %v297_v12 = vld [vmem:[#allocation8 + $0x228] sm:$0xff]  ;;  %v294_v46 = vld [vmem:[#allocation8 + $0x210] sm:$0xff]  ;;  %v174_v5 = vld [vmem:[#allocation7] sm:$0xff] }
  0xa9   :  { %476 = vmatpush.msrb.mxu2 %v339_v50  ;;  %463 = vmatpush.msrb.mxu1 %v316_v22  ;;  %v313_v33 = vld [vmem:[#allocation8 + $0x2a8] sm:$0xff]  ;;  %v310_v47 = vld [vmem:[#allocation8 + $0x290] sm:$0xff]  ;;  %v176_v14 = vperm.slane %v174_v5, 0 }
  0xaa   :  { %126 = vadd.xlane.f32.xlu0 %v125_v34  ;;  %496 = vmatpush.msrb.mxu3 %v355_v51  ;;  %v329_v34 = vld [vmem:[#allocation8 + $0x328] sm:$0xff]  ;;  %v342_v50 = vld [vmem:[#allocation8 + $0x390] sm:$0xff] }
  0xab   :  { %477 = vmatpush.msrb.mxu2 %v338_v57  ;;  %444 = vmatpush.msrb.mxu0 %v299_v26  ;;  %v293_v51 = vld [vmem:[#allocation8 + $0x208] sm:$0xff] }
  0xac   :  { %497 = vmatpush.msrb.mxu3 %v354_v58  ;;  %464 = vmatpush.msrb.mxu1 %v315_v10  ;;  %v341_v58 = vld [vmem:[#allocation8 + $0x388] sm:$0xff] }
  0xad   :  { %478 = vmatpush.msrb.mxu2 %v337_v62  ;;  %445 = vmatpush.msrb.mxu0 %v298_v29  ;;  %v324_v62 = vld [vmem:[#allocation8 + $0x300] sm:$0xff] }
  0xae   :  { %498 = vmatpush.msrb.mxu3 %v353_v63  ;;  %465 = vmatpush.msrb.mxu1 %v314_v30  ;;  %v340_v63 = vld [vmem:[#allocation8 + $0x380] sm:$0xff] }
  0xaf   :  { %479 = vmatpush.msrb.mxu2 %v336_v3  ;;  %446 = vmatpush.msrb.mxu0 %v297_v12 }
  0xb0   :  { %499 = vmatpush.msrb.mxu3 %v352_v4  ;;  %466 = vmatpush.msrb.mxu1 %v313_v33  ;;  %v148_v4 = vld [vmem:[#allocation5] sm:$0xff]  ;;  %v180_v33 = vperm.slane %v174_v5, 4 }
  0xb1   :  { %480 = vmatpush.msrb.mxu2 %v335_v9  ;;  %447 = vmatpush.msrb.mxu0 %v296_v36  ;;  %v151_v6 = vperm.slane %v148_v4, 1  ;;  %v153_v17 = vperm.slane %v148_v4, 3  ;;  %v154_v21 = vperm.slane %v148_v4, 4 }
  0xb2   :  { %500 = vmatpush.msrb.mxu3 %v351_v11  ;;  %467 = vmatpush.msrb.mxu1 %v312_v37  ;;  %v150_v11 = vperm.slane %v148_v4, 0  ;;  %v157_v37 = vperm.slane %v148_v4, 7 }
  0xb3   :  { %481 = vmatpush.msrb.mxu2 %v334_v15  ;;  %448 = vmatpush.msrb.mxu0 %v295_v40  ;;  %v177_v15 = vperm.slane %v174_v5, 1  ;;  %v182_v40 = vperm.slane %v174_v5, 6 }
  0xb4   :  { %501 = vmatpush.msrb.mxu3 %v350_v16  ;;  %468 = vmatpush.msrb.mxu1 %v311_v41  ;;  %v152_v16 = vperm.slane %v148_v4, 2 }
  0xb5   :  { %482 = vmatpush.msrb.mxu2 %v333_v20  ;;  %449 = vmatpush.msrb.mxu0 %v294_v46  ;;  %v178_v20 = vperm.slane %v174_v5, 2  ;;  %v183_v46 = vperm.slane %v174_v5, 7 }
  0xb6   :  { %502 = vmatpush.msrb.mxu3 %v349_v8  ;;  %469 = vmatpush.msrb.mxu1 %v310_v47  ;;  %v179_v8 = vperm.slane %v174_v5, 3 }
  0xb7   :  { %483 = vmatpush.msrb.mxu2 %v332_v23  ;;  %450 = vmatpush.msrb.mxu0 %v293_v51 }
  0xb8   :  { %503 = vmatpush.msrb.mxu3 %v348_v24  ;;  %470 = vmatpush.msrb.mxu1 %v309_v52 }
  0xb9   :  { %484 = vmatpush.msrb.mxu2 %v331_v27  ;;  %451 = vmatpush.msrb.mxu0 %v292_v60 }
  0xba   :  { %504 = vmatpush.msrb.mxu3 %v347_v28  ;;  %471 = vmatpush.msrb.mxu1 %v308_v61  ;;  %v155_v28 = vperm.slane %v148_v4, 5 }
  0xbb   :  { %485 = vmatpush.msrb.mxu2 %v330_v31 }
  0xbc   :  { %505 = vmatpush.msrb.mxu3 %v346_v32 }
  0xbd   :  { %486 = vmatpush.msrb.mxu2 %v329_v34 }
  0xbe   :  { %506 = vmatpush.msrb.mxu3 %v345_v35 }
  0xbf   :  { %487 = vmatpush.msrb.mxu2 %v328_v38 }
  0xc0   :  { %507 = vmatpush.msrb.mxu3 %v344_v39  ;;  %v181_v39 = vperm.slane %v174_v5, 5 }
  0xc1   :  { %488 = vmatpush.msrb.mxu2 %v327_v42 }
  0xc2   :  { %508 = vmatpush.msrb.mxu3 %v343_v44 }
  0xc3   :  { %489 = vmatpush.msrb.mxu2 %v326_v48 }
  0xc4   :  { %509 = vmatpush.msrb.mxu3 %v342_v50 }
  0xc5   :  { %490 = vmatpush.msrb.mxu2 %v325_v56 }
  0xc6   :  { %510 = vmatpush.msrb.mxu3 %v341_v58 }
  0xc7   :  { %491 = vmatpush.msrb.mxu2 %v324_v62 }
  0xc8   :  { %511 = vmatpush.msrb.mxu3 %v340_v63 }
 0x11d   :  { %v127_v45 = vpop.xlane.xlu0 %126 }
 0x11e   :  { %v128_v49 = vmul.f32 %v127_v45, %v759_v43 }
 0x120   :  { %v129_v57 = vadd.f32 1e-05, %v128_v49 }
 0x122   :  { %553 = vrsqrt.f32 %v129_v57  ;;  %vm136_vm2 = vweird.f32 %v129_v57 }
 0x128   :  { %v554_v43 = vpop.eup %553 }
 0x129   :  { %v131_v0 = vmul.f32 %v554_v43, %v129_v57  ;;  %vm137_vm1 = vweird.f32 %v554_v43 }
 0x12a   :  { %vm138_vm3 = vmor %vm136_vm2, %vm137_vm1 }
 0x12b   :  { %v132_v1 = vmul.f32 %v554_v43, %v131_v0 }
 0x12d   :  { %v133_v3 = vmul.f32 0.5, %v132_v1 }
 0x12f   :  { %v134_v7 = vsub.f32 1.5, %v133_v3 }
 0x131   :  { %v135_v9 = vmul.f32 %v554_v43, %v134_v7 }
 0x133   :  { %v139_v18 = vsel %vm138_vm3, %v554_v43, %v135_v9 }
 0x134   :  { %v140_v22 = vmul.f32 %v139_v18, %v763_v53  ;;  %v141_v23 = vmul.f32 %v139_v18, %v766_v54  ;;  %v142_v24 = vmul.f32 %v139_v18, %v769_v55  ;;  %v143_v26 = vmul.f32 %v139_v18, %v772_v59 }
 0x135   :  { %v144_v10 = vmul.f32 %v139_v18, %v779_v2  ;;  %v145_v27 = vmul.f32 %v139_v18, %v784_v13  ;;  %v146_v34 = vmul.f32 %v139_v18, %v789_v19  ;;  %v156_v53 = vperm.slane %v148_v4, 6 }
 0x136   :  { %v166_v29 = vmul.f32 %v150_v11, %v140_v22  ;;  %v167_v30 = vmul.f32 %v151_v6, %v141_v23  ;;  %v168_v31 = vmul.f32 %v152_v16, %v142_v24  ;;  %v169_v32 = vmul.f32 %v153_v17, %v143_v26 }
 0x137   :  { %v170_v12 = vmul.f32 %v154_v21, %v144_v10  ;;  %v147_v59 = vmul.f32 %v139_v18, %v794_v25  ;;  %v171_v38 = vmul.f32 %v155_v28, %v145_v27  ;;  %v172_v44 = vmul.f32 %v156_v53, %v146_v34  ;;  %v550_v27 = vld [vmem:[%s821_s4] ss:$0 sm:$0xff] }
 0x138   :  { %v192_v35 = vadd.f32 %v176_v14, %v166_v29  ;;  %v193_v54 = vadd.f32 %v177_v15, %v167_v30  ;;  %v194_v36 = vadd.f32 %v178_v20, %v168_v31  ;;  %v195_v55 = vadd.f32 %v179_v8, %v169_v32 }
 0x139   :  { %v196_v19 = vadd.f32 %v180_v33, %v170_v12  ;;  %v173_v45 = vmul.f32 %v157_v37, %v147_v59  ;;  %v197_v49 = vadd.f32 %v181_v39, %v171_v38  ;;  %v198_v51 = vadd.f32 %v182_v40, %v172_v44 }
 0x13a   :  { %v200_v2 = vmul.f32 %v192_v35, %v192_v35  ;;  %372 = vmatmul.f32.vlgmr.msra.gmra.mxu0 %v192_v35  ;;  %v201_v13 = vmul.f32 %v193_v54, %v193_v54  ;;  %392 = vmatmul.f32.vlgmr.msra.gmra.mxu1 %v193_v54  ;;  %v202_v42 = vmul.f32 %v194_v36, %v194_v36 }
 0x13b   :  { %412 = vmatmul.f32.vlgmr.msra.gmra.mxu2 %v194_v36  ;;  %432 = vmatmul.f32.vlgmr.msra.gmra.mxu3 %v195_v55  ;;  %v203_v48 = vmul.f32 %v195_v55, %v195_v55  ;;  %v204_v50 = vmul.f32 %v196_v19, %v196_v19  ;;  %v199_v52 = vadd.f32 %v183_v46, %v173_v45 }
 0x13c   :  { %v208_v41 = vadd.f32 %v201_v13, %v200_v2  ;;  %v205_v56 = vmul.f32 %v197_v49, %v197_v49  ;;  %v206_v58 = vmul.f32 %v198_v51, %v198_v51 }
 0x13d   :  { %v207_v61 = vmul.f32 %v199_v52, %v199_v52 }
 0x13e   :  { %v209_v47 = vadd.f32 %v208_v41, %v202_v42 }
 0x140   :  { %v210_v25 = vadd.f32 %v209_v47, %v203_v48 }
 0x142   :  { %452 = vmatmul.f32.vlgmr.msrb.gmra.mxu0 %v196_v19  ;;  %472 = vmatmul.f32.vlgmr.msrb.gmra.mxu1 %v197_v49  ;;  %v211_v57 = vadd.f32 %v210_v25, %v204_v50 }
 0x143   :  { %492 = vmatmul.f32.vlgmr.msrb.gmra.mxu2 %v198_v51  ;;  %512 = vmatmul.f32.vlgmr.msrb.gmra.mxu3 %v199_v52 }
 0x144   :  { %v212_v60 = vadd.f32 %v211_v57, %v205_v56 }
 0x146   :  { %v213_v62 = vadd.f32 %v212_v60, %v206_v58 }
 0x148   :  { %v214_v63 = vadd.f32 %v213_v62, %v207_v61 }
 0x14a   :  { %215 = vadd.xlane.f32.xlu1 %v214_v63 }
 0x1b7   :  { %v373_v43 = vpop.f32.mrf.mxu0  ;;  %v393_v0 = vpop.f32.mrf.mxu1 }
 0x1b8   :  { %v394_v1 = vadd.f32 %v393_v0, %v373_v43 }
 0x1bd   :  { %v216_v3 = vpop.xlane.xlu1 %215 }
 0x1be   :  { %v413_v4 = vpop.f32.mrf.mxu2  ;;  %v217_v5 = vmax.f32 %v216_v3, 1e-24  ;;  %v433_v9 = vpop.f32.mrf.mxu3 }
 0x1bf   :  { %v414_v7 = vadd.f32 %v413_v4, %v394_v1  ;;  %v453_v14 = vpop.f32.mrf.mxu0  ;;  %v473_v17 = vpop.f32.mrf.mxu1 }
 0x1c0   :  { %555 = vrsqrt.f32 %v217_v5  ;;  %vm224_vm5 = vweird.f32 %v217_v5 }
 0x1c1   :  { %v434_v11 = vadd.f32 %v433_v9, %v414_v7 }
 0x1c3   :  { %v454_v6 = vadd.f32 %v453_v14, %v434_v11 }
 0x1c5   :  { %v474_v18 = vadd.f32 %v473_v17, %v454_v6 }
 0x1c6   :  { %v556_v15 = vpop.eup %555  ;;  %v493_v8 = vpop.f32.mrf.mxu2 }
 0x1c7   :  { %v219_v16 = vmul.f32 %v556_v15, %v217_v5  ;;  %v494_v22 = vadd.f32 %v493_v8, %v474_v18  ;;  %vm225_vm4 = vweird.f32 %v556_v15  ;;  %v513_v26 = vpop.f32.mrf.mxu3 }
 0x1c8   :  { %vm226_vm6 = vmor %vm224_vm5, %vm225_vm4 }
 0x1c9   :  { %v220_v20 = vmul.f32 %v556_v15, %v219_v16  ;;  %v514_v10 = vadd.f32 %v513_v26, %v494_v22 }
 0x1cb   :  { %v221_v21 = vmul.f32 0.5, %v220_v20 }
 0x1cd   :  { %v222_v23 = vsub.f32 1.5, %v221_v21 }
 0x1cf   :  { %v223_v24 = vmul.f32 %v556_v15, %v222_v23 }
 0x1d1   :  { %v227_v28 = vsel %vm226_vm6, %v556_v15, %v223_v24 }
 0x1d2   :  { %v516_v29 = vmul.f32 %v514_v10, %v227_v28 }
 0x1d4   :  { %v521_v30 = vadd.f32 %v550_v27, %v516_v29 }
 0x1d6   :  { %522 = vst [vmem:[#allocation10] sm:$0xff] %v521_v30 }
 0x1d7   :  { %533 = dma.vmem_to_hbm [thread:$0]  %s529_s14, 128, %s531_s17, [#allocation4]  }
 0x1d8   :  { %683 = dma.done.wait [#allocation4], 128  }
 0x1d9   :  { %684 = vsyncadd [#allocation4], 4294967168 }
 0x1da   :  { %538 = vsyncpa [#allocation3], 1 }
 0x1db   :  { %539 = vsyncpa [#allocation6], 1 }
 0x1dc   :  { %540 = vsyncpa [#allocation9], 1 }
 0x1dd   :  { %541 = vsyncpa [#allocation4], 1 }

// kernel: tpu_custom_call.1
= control target key start
LH: loop header
LB: loop body
LE: loop exit
PB: predicated region body
PF: predicated region fallthrough
CT: control target
= control target key end

     0   :  { %10 = vsyncpa [#allocation3], 0  ;;  %s817_s0 = inlined_call_operand.hbm [shape: f32[8,1024], index: 0, kind: input, shape index: {}]   ;;  %s818_s1 = inlined_call_operand.hbm [shape: f32[1,1024], index: 1, kind: input, shape index: {}]   ;;  %s819_s2 = inlined_call_operand.hbm [shape: f32[1,1024], index: 2, kind: input, shape index: {}]   ;;  %s820_s3 = inlined_call_operand.hbm [shape: f32[1024,128], index: 3, kind: input, shape index: {}]   ;;  %s821_s4 = inlined_call_operand.vmem [shape: f32[1,128], index: 4, kind: input, shape index: {}]   ;;  %s822_s5 = inlined_call_operand.hbm [shape: f32[8,128], index: 5, kind: output, shape index: {}]  }
   0x1   :  { %11 = vsyncpa [#allocation6], 0 }
   0x2   :  { %12 = vsyncpa [#allocation9], 0  ;;  %s30_s20 = sshll.u32 %s818_s1, 4  ;;  %s31_s20 = int_to_ptr.hbm [resolvable:$true] %s30_s20 }
   0x3   :  { %13 = vsyncpa [#allocation4], 0  ;;  %s685_s21 = smov [#allocation5]   ;;  %s19_s25 = sshll.u32 %s817_s0, 4  ;;  %s20_s25 = int_to_ptr.hbm [resolvable:$true] %s19_s25 }
   0x4   :  { %s32_s22 = sshll.u32 %s685_s21, 4  ;;  %s686_s26 = smov [#allocation2]   ;;  %s33_s22 = int_to_ptr.vmem [resolvable:$true] %s32_s22 }
   0x5   :  { %35 = dma.hbm_to_vmem [thread:$0]  %s31_s20, 128, %s33_s22, [#allocation6]  }
   0x6   :  { %s21_s27 = sshll.u32 %s686_s26, 4  ;;  %s41_s30 = sshll.u32 %s819_s2, 4  ;;  %s22_s27 = int_to_ptr.vmem [resolvable:$true] %s21_s27  ;;  %s42_s30 = int_to_ptr.hbm [resolvable:$true] %s41_s30 }
   0x7   :  { %24 = dma.hbm_to_vmem [thread:$0]  %s20_s25, 1024, %s22_s27, [#allocation3]  }
   0x8   :  { %s51_s7 = sshll.u32 %s820_s3, 4  ;;  %s687_s8 = smov [#allocation7]   ;;  %s52_s7 = int_to_ptr.hbm [resolvable:$true] %s51_s7 }
   0x9   :  { %s43_s9 = sshll.u32 %s687_s8, 4  ;;  %s688_s0 = smov [#allocation8]   ;;  %s44_s9 = int_to_ptr.vmem [resolvable:$true] %s43_s9 }
   0xa   :  { %46 = dma.hbm_to_vmem [thread:$0]  %s42_s30, 128, %s44_s9, [#allocation6]  }
   0xb   :  { %s53_s10 = sshll.u32 %s688_s0, 4  ;;  %s689_s11 = smov 128   ;;  %s54_s10 = int_to_ptr.vmem [resolvable:$true] %s53_s10 }
   0xc   :  { %s690_s12 = smov 8  }
   0xd   :  { %59 = dma.hbm_to_vmem [thread:$0]  %s52_s7, 16384, %s54_s10, [#allocation9], %s689_s11, %s689_s11, %s690_s12  }
   0xe   :  { %677 = dma.done.wait [#allocation3], 1024  }
   0xf   :  { %678 = vsyncadd [#allocation3], 4294966272 }
  0x10   :  { %679 = dma.done.wait [#allocation6], 256  }
  0x11   :  { %680 = vsyncadd [#allocation6], 4294967040 }
  0x12   :  { %681 = dma.done.wait [#allocation9], 16384  }
  0x13   :  { %682 = vsyncadd [#allocation9], 4294950912  ;;  %v735_v0 = vld [vmem:[#allocation2] sm:$0xff]  ;;  %v737_v1 = vld [vmem:[#allocation2 + $0x8] sm:$0xff]  ;;  %v691_v15 = vmov 1024.0   ;;  %s692_s13 = smov [#allocation10]  }
  0x14   :  { %v739_v2 = vld [vmem:[#allocation2 + $0x10] sm:$0xff]  ;;  %v86_v3 = vadd.f32 %v737_v1, %v735_v0  ;;  %v743_v4 = vld [vmem:[#allocation2 + $0x18] sm:$0xff]  ;;  %v746_v6 = vld [vmem:[#allocation2 + $0x20] sm:$0xff]  ;;  %551 = vrcp.f32 %v691_v15  ;;  %s528_s14 = sshll.u32 %s692_s13, 4  ;;  %s530_s17 = sshll.u32 %s822_s5, 4  ;;  %s529_s14 = int_to_ptr.vmem [resolvable:$true] %s528_s14  ;;  %s531_s17 = int_to_ptr.hbm [resolvable:$true] %s530_s17 }
  0x15   :  { %v749_v8 = vld [vmem:[#allocation2 + $0x28] sm:$0xff]  ;;  %v752_v10 = vld [vmem:[#allocation2 + $0x30] sm:$0xff]  ;;  %v755_v12 = vld [vmem:[#allocation2 + $0x38] sm:$0xff] }
  0x16   :  { %v87_v5 = vadd.f32 %v86_v3, %v739_v2  ;;  %v243_v19 = vld [vmem:[#allocation8 + $0x78] sm:$0xff]  ;;  %v242_v24 = vld [vmem:[#allocation8 + $0x70] sm:$0xff]  ;;  %v241_v28 = vld [vmem:[#allocation8 + $0x68] sm:$0xff] }
  0x17   :  { %v259_v20 = vld [vmem:[#allocation8 + $0xf8] sm:$0xff]  ;;  %356 = vmatpush.msra.mxu0 %v243_v19  ;;  %v258_v25 = vld [vmem:[#allocation8 + $0xf0] sm:$0xff]  ;;  %v257_v29 = vld [vmem:[#allocation8 + $0xe8] sm:$0xff] }
  0x18   :  { %v88_v7 = vadd.f32 %v87_v5, %v743_v4  ;;  %v275_v21 = vld [vmem:[#allocation8 + $0x178] sm:$0xff]  ;;  %376 = vmatpush.msra.mxu1 %v259_v20  ;;  %v274_v26 = vld [vmem:[#allocation8 + $0x170] sm:$0xff]  ;;  %v273_v30 = vld [vmem:[#allocation8 + $0x168] sm:$0xff] }
  0x19   :  { %v291_v23 = vld [vmem:[#allocation8 + $0x1f8] sm:$0xff]  ;;  %396 = vmatpush.msra.mxu2 %v275_v21  ;;  %v290_v27 = vld [vmem:[#allocation8 + $0x1f0] sm:$0xff]  ;;  %357 = vmatpush.msra.mxu0 %v242_v24  ;;  %v289_v31 = vld [vmem:[#allocation8 + $0x1e8] sm:$0xff] }
  0x1a   :  { %v89_v9 = vadd.f32 %v88_v7, %v746_v6  ;;  %v552_v16 = vpop.eup %551  ;;  %416 = vmatpush.msra.mxu3 %v291_v23  ;;  %377 = vmatpush.msra.mxu1 %v258_v25  ;;  %v240_v32 = vld [vmem:[#allocation8 + $0x60] sm:$0xff]  ;;  %v239_v37 = vld [vmem:[#allocation8 + $0x58] sm:$0xff]  ;;  %v238_v41 = vld [vmem:[#allocation8 + $0x50] sm:$0xff] }
  0x1b   :  { %v96_v17 = vmul.f32 1024.0, %v552_v16  ;;  %397 = vmatpush.msra.mxu2 %v274_v26  ;;  %v256_v33 = vld [vmem:[#allocation8 + $0xe0] sm:$0xff]  ;;  %358 = vmatpush.msra.mxu0 %v241_v28  ;;  %vm100_vm0 = vweird.f32 %v552_v16  ;;  %v255_v38 = vld [vmem:[#allocation8 + $0xd8] sm:$0xff]  ;;  %v254_v42 = vld [vmem:[#allocation8 + $0xd0] sm:$0xff] }
  0x1c   :  { %v90_v11 = vadd.f32 %v89_v9, %v749_v8  ;;  %417 = vmatpush.msra.mxu3 %v290_v27  ;;  %378 = vmatpush.msra.mxu1 %v257_v29  ;;  %v272_v35 = vld [vmem:[#allocation8 + $0x160] sm:$0xff]  ;;  %v271_v39 = vld [vmem:[#allocation8 + $0x158] sm:$0xff]  ;;  %v270_v44 = vld [vmem:[#allocation8 + $0x150] sm:$0xff] }
  0x1d   :  { %v97_v18 = vsub.f32 1.0, %v96_v17  ;;  %v288_v36 = vld [vmem:[#allocation8 + $0x1e0] sm:$0xff]  ;;  %398 = vmatpush.msra.mxu2 %v273_v30  ;;  %359 = vmatpush.msra.mxu0 %v240_v32  ;;  %v287_v40 = vld [vmem:[#allocation8 + $0x1d8] sm:$0xff]  ;;  %v286_v45 = vld [vmem:[#allocation8 + $0x1d0] sm:$0xff] }
  0x1e   :  { %v91_v13 = vadd.f32 %v90_v11, %v752_v10  ;;  %418 = vmatpush.msra.mxu3 %v289_v31  ;;  %379 = vmatpush.msra.mxu1 %v256_v33  ;;  %v237_v46 = vld [vmem:[#allocation8 + $0x48] sm:$0xff]  ;;  %v236_v52 = vld [vmem:[#allocation8 + $0x40] sm:$0xff]  ;;  %v235_v62 = vld [vmem:[#allocation8 + $0x38] sm:$0xff] }
  0x1f   :  { %v98_v22 = vmul.f32 %v552_v16, %v97_v18  ;;  %399 = vmatpush.msra.mxu2 %v272_v35  ;;  %360 = vmatpush.msra.mxu0 %v239_v37  ;;  %v253_v47 = vld [vmem:[#allocation8 + $0xc8] sm:$0xff]  ;;  %v252_v56 = vld [vmem:[#allocation8 + $0xc0] sm:$0xff]  ;;  %v251_v63 = vld [vmem:[#allocation8 + $0xb8] sm:$0xff] }
  0x20   :  { %v92_v14 = vadd.f32 %v91_v13, %v755_v12  ;;  %419 = vmatpush.msra.mxu3 %v288_v36  ;;  %380 = vmatpush.msra.mxu1 %v255_v38  ;;  %v269_v49 = vld [vmem:[#allocation8 + $0x148] sm:$0xff]  ;;  %v268_v57 = vld [vmem:[#allocation8 + $0x140] sm:$0xff]  ;;  %v234_v5 = vld [vmem:[#allocation8 + $0x30] sm:$0xff] }
  0x21   :  { %v99_v34 = vadd.f32 %v552_v16, %v98_v22  ;;  %400 = vmatpush.msra.mxu2 %v271_v39  ;;  %361 = vmatpush.msra.mxu0 %v238_v41  ;;  %v285_v51 = vld [vmem:[#allocation8 + $0x1c8] sm:$0xff]  ;;  %v284_v58 = vld [vmem:[#allocation8 + $0x1c0] sm:$0xff]  ;;  %v250_v7 = vld [vmem:[#allocation8 + $0xb0] sm:$0xff] }
  0x22   :  { %93 = vadd.xlane.f32.xlu0 %v92_v14  ;;  %420 = vmatpush.msra.mxu3 %v287_v40  ;;  %v266_v9 = vld [vmem:[#allocation8 + $0x130] sm:$0xff]  ;;  %v233_v15 = vld [vmem:[#allocation8 + $0x28] sm:$0xff]  ;;  %v232_v21 = vld [vmem:[#allocation8 + $0x20] sm:$0xff] }
  0x23   :  { %v759_v43 = vsel %vm100_vm0, %v552_v16, %v99_v34  ;;  %381 = vmatpush.msra.mxu1 %v254_v42  ;;  %401 = vmatpush.msra.mxu2 %v270_v44  ;;  %v282_v11 = vld [vmem:[#allocation8 + $0x1b0] sm:$0xff]  ;;  %v249_v16 = vld [vmem:[#allocation8 + $0xa8] sm:$0xff]  ;;  %v248_v22 = vld [vmem:[#allocation8 + $0xa0] sm:$0xff] }
  0x24   :  { %421 = vmatpush.msra.mxu3 %v286_v45  ;;  %362 = vmatpush.msra.mxu0 %v237_v46  ;;  %v265_v17 = vld [vmem:[#allocation8 + $0x128] sm:$0xff]  ;;  %v264_v23 = vld [vmem:[#allocation8 + $0x120] sm:$0xff]  ;;  %v231_v27 = vld [vmem:[#allocation8 + $0x18] sm:$0xff] }
  0x25   :  { %382 = vmatpush.msra.mxu1 %v253_v47  ;;  %402 = vmatpush.msra.mxu2 %v269_v49  ;;  %v281_v18 = vld [vmem:[#allocation8 + $0x1a8] sm:$0xff]  ;;  %v280_v24 = vld [vmem:[#allocation8 + $0x1a0] sm:$0xff]  ;;  %v247_v28 = vld [vmem:[#allocation8 + $0x98] sm:$0xff] }
  0x26   :  { %422 = vmatpush.msra.mxu3 %v285_v51  ;;  %363 = vmatpush.msra.mxu0 %v236_v52  ;;  %v263_v29 = vld [vmem:[#allocation8 + $0x118] sm:$0xff]  ;;  %v230_v35 = vld [vmem:[#allocation8 + $0x10] sm:$0xff]  ;;  %v229_v39 = vld [vmem:[#allocation8 + $0x8] sm:$0xff] }
  0x27   :  { %383 = vmatpush.msra.mxu1 %v252_v56  ;;  %403 = vmatpush.msra.mxu2 %v268_v57  ;;  %v279_v30 = vld [vmem:[#allocation8 + $0x198] sm:$0xff]  ;;  %v246_v36 = vld [vmem:[#allocation8 + $0x90] sm:$0xff]  ;;  %v245_v40 = vld [vmem:[#allocation8 + $0x88] sm:$0xff] }
  0x28   :  { %423 = vmatpush.msra.mxu3 %v284_v58  ;;  %364 = vmatpush.msra.mxu0 %v235_v62  ;;  %v262_v37 = vld [vmem:[#allocation8 + $0x110] sm:$0xff]  ;;  %v261_v41 = vld [vmem:[#allocation8 + $0x108] sm:$0xff]  ;;  %v228_v44 = vld [vmem:[#allocation8] sm:$0xff] }
  0x29   :  { %384 = vmatpush.msra.mxu1 %v251_v63  ;;  %v278_v38 = vld [vmem:[#allocation8 + $0x190] sm:$0xff]  ;;  %v277_v42 = vld [vmem:[#allocation8 + $0x188] sm:$0xff]  ;;  %v244_v45 = vld [vmem:[#allocation8 + $0x80] sm:$0xff] }
  0x2a   :  { %365 = vmatpush.msra.mxu0 %v234_v5  ;;  %v260_v46 = vld [vmem:[#allocation8 + $0x100] sm:$0xff]  ;;  %v323_v49 = vld [vmem:[#allocation8 + $0x2f8] sm:$0xff]  ;;  %v306_v52 = vld [vmem:[#allocation8 + $0x270] sm:$0xff] }
  0x2b   :  { %385 = vmatpush.msra.mxu1 %v250_v7  ;;  %v276_v47 = vld [vmem:[#allocation8 + $0x180] sm:$0xff]  ;;  %v355_v51 = vld [vmem:[#allocation8 + $0x3f8] sm:$0xff]  ;;  %v322_v56 = vld [vmem:[#allocation8 + $0x2f0] sm:$0xff] }
  0x2c   :  { %366 = vmatpush.msra.mxu0 %v233_v15  ;;  %v338_v57 = vld [vmem:[#allocation8 + $0x370] sm:$0xff]  ;;  %v337_v62 = vld [vmem:[#allocation8 + $0x368] sm:$0xff]  ;;  %v303_v5 = vld [vmem:[#allocation8 + $0x258] sm:$0xff] }
  0x2d   :  { %386 = vmatpush.msra.mxu1 %v249_v16  ;;  %v354_v58 = vld [vmem:[#allocation8 + $0x3f0] sm:$0xff]  ;;  %v353_v63 = vld [vmem:[#allocation8 + $0x3e8] sm:$0xff]  ;;  %v319_v7 = vld [vmem:[#allocation8 + $0x2d8] sm:$0xff] }
  0x2e   :  { %367 = vmatpush.msra.mxu0 %v232_v21  ;;  %v334_v15 = vld [vmem:[#allocation8 + $0x350] sm:$0xff]  ;;  %v300_v21 = vld [vmem:[#allocation8 + $0x240] sm:$0xff] }
  0x2f   :  { %387 = vmatpush.msra.mxu1 %v248_v22  ;;  %v350_v16 = vld [vmem:[#allocation8 + $0x3d0] sm:$0xff]  ;;  %v316_v22 = vld [vmem:[#allocation8 + $0x2c0] sm:$0xff] }
  0x30   :  { %368 = vmatpush.msra.mxu0 %v231_v27  ;;  %v331_v27 = vld [vmem:[#allocation8 + $0x338] sm:$0xff] }
  0x31   :  { %388 = vmatpush.msra.mxu1 %v247_v28  ;;  %v347_v28 = vld [vmem:[#allocation8 + $0x3b8] sm:$0xff] }
  0x32   :  { %369 = vmatpush.msra.mxu0 %v230_v35  ;;  %v345_v35 = vld [vmem:[#allocation8 + $0x3a8] sm:$0xff] }
  0x33   :  { %389 = vmatpush.msra.mxu1 %v246_v36  ;;  %v296_v36 = vld [vmem:[#allocation8 + $0x220] sm:$0xff] }
  0x34   :  { %370 = vmatpush.msra.mxu0 %v229_v39  ;;  %v344_v39 = vld [vmem:[#allocation8 + $0x3a0] sm:$0xff] }
  0x35   :  { %390 = vmatpush.msra.mxu1 %v245_v40  ;;  %v295_v40 = vld [vmem:[#allocation8 + $0x218] sm:$0xff] }
  0x36   :  { %371 = vmatpush.msra.mxu0 %v228_v44  ;;  %v343_v44 = vld [vmem:[#allocation8 + $0x398] sm:$0xff] }
  0x37   :  { %391 = vmatpush.msra.mxu1 %v244_v45 }
  0x39   :  { %456 = vmatpush.msrb.mxu1 %v323_v49 }
  0x3b   :  { %457 = vmatpush.msrb.mxu1 %v322_v56  ;;  %v325_v56 = vld [vmem:[#allocation8 + $0x308] sm:$0xff] }
  0x95   :  { %v94_v48 = vpop.xlane.xlu0 %93 }
  0x96   :  { %v102_v50 = vmul.f32 %v759_v43, %v94_v48  ;;  %v307_v48 = vld [vmem:[#allocation8 + $0x278] sm:$0xff] }
  0x97   :  { %436 = vmatpush.msrb.mxu0 %v307_v48  ;;  %v326_v48 = vld [vmem:[#allocation8 + $0x310] sm:$0xff] }
  0x98   :  { %v763_v53 = vsub.f32 %v735_v0, %v102_v50  ;;  %v766_v54 = vsub.f32 %v737_v1, %v102_v50  ;;  %v769_v55 = vsub.f32 %v739_v2, %v102_v50  ;;  %v772_v59 = vsub.f32 %v743_v4, %v102_v50  ;;  %v267_v0 = vld [vmem:[#allocation8 + $0x138] sm:$0xff] }
  0x99   :  { %v283_v1 = vld [vmem:[#allocation8 + $0x1b8] sm:$0xff]  ;;  %v779_v2 = vsub.f32 %v746_v6, %v102_v50  ;;  %v784_v13 = vsub.f32 %v749_v8, %v102_v50  ;;  %404 = vmatpush.msra.mxu2 %v267_v0  ;;  %v789_v19 = vsub.f32 %v752_v10, %v102_v50  ;;  %v794_v25 = vsub.f32 %v755_v12, %v102_v50  ;;  %v304_v0 = vld [vmem:[#allocation8 + $0x260] sm:$0xff] }
  0x9a   :  { %v111_v60 = vmul.f32 %v763_v53, %v763_v53  ;;  %v112_v61 = vmul.f32 %v766_v54, %v766_v54  ;;  %v113_v3 = vmul.f32 %v769_v55, %v769_v55  ;;  %v114_v14 = vmul.f32 %v772_v59, %v772_v59  ;;  %424 = vmatpush.msra.mxu3 %v283_v1  ;;  %v339_v50 = vld [vmem:[#allocation8 + $0x378] sm:$0xff]  ;;  %v320_v1 = vld [vmem:[#allocation8 + $0x2e0] sm:$0xff] }
  0x9b   :  { %v115_v20 = vmul.f32 %v779_v2, %v779_v2  ;;  %405 = vmatpush.msra.mxu2 %v266_v9  ;;  %v116_v26 = vmul.f32 %v784_v13, %v784_v13  ;;  %v117_v31 = vmul.f32 %v789_v19, %v789_v19  ;;  %v118_v12 = vmul.f32 %v794_v25, %v794_v25  ;;  %v335_v9 = vld [vmem:[#allocation8 + $0x358] sm:$0xff] }
  0x9c   :  { %v119_v4 = vadd.f32 %v112_v61, %v111_v60  ;;  %425 = vmatpush.msra.mxu3 %v282_v11  ;;  %437 = vmatpush.msrb.mxu0 %v306_v52  ;;  %v305_v60 = vld [vmem:[#allocation8 + $0x268] sm:$0xff]  ;;  %v351_v11 = vld [vmem:[#allocation8 + $0x3d8] sm:$0xff] }
  0x9d   :  { %406 = vmatpush.msra.mxu2 %v265_v17  ;;  %v321_v61 = vld [vmem:[#allocation8 + $0x2e8] sm:$0xff] }
  0x9e   :  { %v120_v6 = vadd.f32 %v119_v4, %v113_v3  ;;  %426 = vmatpush.msra.mxu3 %v281_v18  ;;  %438 = vmatpush.msrb.mxu0 %v305_v60  ;;  %v336_v3 = vld [vmem:[#allocation8 + $0x360] sm:$0xff]  ;;  %v301_v17 = vld [vmem:[#allocation8 + $0x248] sm:$0xff] }
  0x9f   :  { %407 = vmatpush.msra.mxu2 %v264_v23  ;;  %458 = vmatpush.msrb.mxu1 %v321_v61  ;;  %v352_v4 = vld [vmem:[#allocation8 + $0x3e0] sm:$0xff]  ;;  %v317_v18 = vld [vmem:[#allocation8 + $0x2c8] sm:$0xff] }
  0xa0   :  { %v121_v8 = vadd.f32 %v120_v6, %v114_v14  ;;  %427 = vmatpush.msra.mxu3 %v280_v24  ;;  %439 = vmatpush.msrb.mxu0 %v304_v0  ;;  %v302_v14 = vld [vmem:[#allocation8 + $0x250] sm:$0xff]  ;;  %v332_v23 = vld [vmem:[#allocation8 + $0x340] sm:$0xff]  ;;  %v309_v52 = vld [vmem:[#allocation8 + $0x288] sm:$0xff] }
  0xa1   :  { %408 = vmatpush.msra.mxu2 %v263_v29  ;;  %459 = vmatpush.msrb.mxu1 %v320_v1  ;;  %v318_v6 = vld [vmem:[#allocation8 + $0x2d0] sm:$0xff]  ;;  %v348_v24 = vld [vmem:[#allocation8 + $0x3c0] sm:$0xff] }
  0xa2   :  { %v122_v10 = vadd.f32 %v121_v8, %v115_v20  ;;  %428 = vmatpush.msra.mxu3 %v279_v30  ;;  %440 = vmatpush.msrb.mxu0 %v303_v5  ;;  %v333_v20 = vld [vmem:[#allocation8 + $0x348] sm:$0xff]  ;;  %v298_v29 = vld [vmem:[#allocation8 + $0x230] sm:$0xff]  ;;  %v292_v60 = vld [vmem:[#allocation8 + $0x200] sm:$0xff] }
  0xa3   :  { %409 = vmatpush.msra.mxu2 %v262_v37  ;;  %460 = vmatpush.msrb.mxu1 %v319_v7  ;;  %v349_v8 = vld [vmem:[#allocation8 + $0x3c8] sm:$0xff]  ;;  %v314_v30 = vld [vmem:[#allocation8 + $0x2b0] sm:$0xff]  ;;  %v312_v37 = vld [vmem:[#allocation8 + $0x2a0] sm:$0xff] }
  0xa4   :  { %v123_v32 = vadd.f32 %v122_v10, %v116_v26  ;;  %429 = vmatpush.msra.mxu3 %v278_v38  ;;  %441 = vmatpush.msrb.mxu0 %v302_v14  ;;  %v299_v26 = vld [vmem:[#allocation8 + $0x238] sm:$0xff]  ;;  %v328_v38 = vld [vmem:[#allocation8 + $0x320] sm:$0xff] }
  0xa5   :  { %410 = vmatpush.msra.mxu2 %v261_v41  ;;  %461 = vmatpush.msrb.mxu1 %v318_v6  ;;  %v315_v10 = vld [vmem:[#allocation8 + $0x2b8] sm:$0xff]  ;;  %v308_v61 = vld [vmem:[#allocation8 + $0x280] sm:$0xff] }
  0xa6   :  { %v124_v33 = vadd.f32 %v123_v32, %v117_v31  ;;  %430 = vmatpush.msra.mxu3 %v277_v42  ;;  %442 = vmatpush.msrb.mxu0 %v301_v17  ;;  %v330_v31 = vld [vmem:[#allocation8 + $0x330] sm:$0xff]  ;;  %v311_v41 = vld [vmem:[#allocation8 + $0x298] sm:$0xff] }
  0xa7   :  { %411 = vmatpush.msra.mxu2 %v260_v46  ;;  %462 = vmatpush.msrb.mxu1 %v317_v18  ;;  %v346_v32 = vld [vmem:[#allocation8 + $0x3b0] sm:$0xff]  ;;  %v327_v42 = vld [vmem:[#allocation8 + $0x318] sm:$0xff] }
  0xa8   :  { %v125_v34 = vadd.f32 %v124_v33, %v118_v12  ;;  %431 = vmatpush.msra.mxu3 %v276_v47  ;;  %443 = vmatpush.msrb.mxu0 %v300_v21  ;;  %v297_v12 = vld [vmem:[#allocation8 + $0x228] sm:$0xff]  ;;  %v294_v46 = vld [vmem:[#allocation8 + $0x210] sm:$0xff]  ;;  %v174_v5 = vld [vmem:[#allocation7] sm:$0xff] }
  0xa9   :  { %476 = vmatpush.msrb.mxu2 %v339_v50  ;;  %463 = vmatpush.msrb.mxu1 %v316_v22  ;;  %v313_v33 = vld [vmem:[#allocation8 + $0x2a8] sm:$0xff]  ;;  %v310_v47 = vld [vmem:[#allocation8 + $0x290] sm:$0xff]  ;;  %v176_v14 = vperm.slane %v174_v5, 0 }
  0xaa   :  { %126 = vadd.xlane.f32.xlu0 %v125_v34  ;;  %496 = vmatpush.msrb.mxu3 %v355_v51  ;;  %v329_v34 = vld [vmem:[#allocation8 + $0x328] sm:$0xff]  ;;  %v342_v50 = vld [vmem:[#allocation8 + $0x390] sm:$0xff] }
  0xab   :  { %477 = vmatpush.msrb.mxu2 %v338_v57  ;;  %444 = vmatpush.msrb.mxu0 %v299_v26  ;;  %v293_v51 = vld [vmem:[#allocation8 + $0x208] sm:$0xff] }
  0xac   :  { %497 = vmatpush.msrb.mxu3 %v354_v58  ;;  %464 = vmatpush.msrb.mxu1 %v315_v10  ;;  %v341_v58 = vld [vmem:[#allocation8 + $0x388] sm:$0xff] }
  0xad   :  { %478 = vmatpush.msrb.mxu2 %v337_v62  ;;  %445 = vmatpush.msrb.mxu0 %v298_v29  ;;  %v324_v62 = vld [vmem:[#allocation8 + $0x300] sm:$0xff] }
  0xae   :  { %498 = vmatpush.msrb.mxu3 %v353_v63  ;;  %465 = vmatpush.msrb.mxu1 %v314_v30  ;;  %v340_v63 = vld [vmem:[#allocation8 + $0x380] sm:$0xff] }
  0xaf   :  { %479 = vmatpush.msrb.mxu2 %v336_v3  ;;  %446 = vmatpush.msrb.mxu0 %v297_v12 }
  0xb0   :  { %499 = vmatpush.msrb.mxu3 %v352_v4  ;;  %466 = vmatpush.msrb.mxu1 %v313_v33  ;;  %v148_v4 = vld [vmem:[#allocation5] sm:$0xff]  ;;  %v180_v33 = vperm.slane %v174_v5, 4 }
  0xb1   :  { %480 = vmatpush.msrb.mxu2 %v335_v9  ;;  %447 = vmatpush.msrb.mxu0 %v296_v36  ;;  %v151_v6 = vperm.slane %v148_v4, 1  ;;  %v153_v17 = vperm.slane %v148_v4, 3  ;;  %v154_v21 = vperm.slane %v148_v4, 4 }
  0xb2   :  { %500 = vmatpush.msrb.mxu3 %v351_v11  ;;  %467 = vmatpush.msrb.mxu1 %v312_v37  ;;  %v150_v11 = vperm.slane %v148_v4, 0  ;;  %v157_v37 = vperm.slane %v148_v4, 7 }
  0xb3   :  { %481 = vmatpush.msrb.mxu2 %v334_v15  ;;  %448 = vmatpush.msrb.mxu0 %v295_v40  ;;  %v177_v15 = vperm.slane %v174_v5, 1  ;;  %v182_v40 = vperm.slane %v174_v5, 6 }
  0xb4   :  { %501 = vmatpush.msrb.mxu3 %v350_v16  ;;  %468 = vmatpush.msrb.mxu1 %v311_v41  ;;  %v152_v16 = vperm.slane %v148_v4, 2 }
  0xb5   :  { %482 = vmatpush.msrb.mxu2 %v333_v20  ;;  %449 = vmatpush.msrb.mxu0 %v294_v46  ;;  %v178_v20 = vperm.slane %v174_v5, 2  ;;  %v183_v46 = vperm.slane %v174_v5, 7 }
  0xb6   :  { %502 = vmatpush.msrb.mxu3 %v349_v8  ;;  %469 = vmatpush.msrb.mxu1 %v310_v47  ;;  %v179_v8 = vperm.slane %v174_v5, 3 }
  0xb7   :  { %483 = vmatpush.msrb.mxu2 %v332_v23  ;;  %450 = vmatpush.msrb.mxu0 %v293_v51 }
  0xb8   :  { %503 = vmatpush.msrb.mxu3 %v348_v24  ;;  %470 = vmatpush.msrb.mxu1 %v309_v52 }
  0xb9   :  { %484 = vmatpush.msrb.mxu2 %v331_v27  ;;  %451 = vmatpush.msrb.mxu0 %v292_v60 }
  0xba   :  { %504 = vmatpush.msrb.mxu3 %v347_v28  ;;  %471 = vmatpush.msrb.mxu1 %v308_v61  ;;  %v155_v28 = vperm.slane %v148_v4, 5 }
  0xbb   :  { %485 = vmatpush.msrb.mxu2 %v330_v31 }
  0xbc   :  { %505 = vmatpush.msrb.mxu3 %v346_v32 }
  0xbd   :  { %486 = vmatpush.msrb.mxu2 %v329_v34 }
  0xbe   :  { %506 = vmatpush.msrb.mxu3 %v345_v35 }
  0xbf   :  { %487 = vmatpush.msrb.mxu2 %v328_v38 }
  0xc0   :  { %507 = vmatpush.msrb.mxu3 %v344_v39  ;;  %v181_v39 = vperm.slane %v174_v5, 5 }
  0xc1   :  { %488 = vmatpush.msrb.mxu2 %v327_v42 }
  0xc2   :  { %508 = vmatpush.msrb.mxu3 %v343_v44 }
  0xc3   :  { %489 = vmatpush.msrb.mxu2 %v326_v48 }
  0xc4   :  { %509 = vmatpush.msrb.mxu3 %v342_v50 }
  0xc5   :  { %490 = vmatpush.msrb.mxu2 %v325_v56 }
  0xc6   :  { %510 = vmatpush.msrb.mxu3 %v341_v58 }
  0xc7   :  { %491 = vmatpush.msrb.mxu2 %v324_v62 }
  0xc8   :  { %511 = vmatpush.msrb.mxu3 %v340_v63 }
 0x11d   :  { %v127_v45 = vpop.xlane.xlu0 %126 }
 0x11e   :  { %v128_v49 = vmul.f32 %v127_v45, %v759_v43 }
 0x120   :  { %v129_v57 = vadd.f32 1e-05, %v128_v49 }
 0x122   :  { %553 = vrsqrt.f32 %v129_v57  ;;  %vm136_vm2 = vweird.f32 %v129_v57 }
 0x128   :  { %v554_v43 = vpop.eup %553 }
 0x129   :  { %v131_v0 = vmul.f32 %v554_v43, %v129_v57  ;;  %vm137_vm1 = vweird.f32 %v554_v43 }
 0x12a   :  { %vm138_vm3 = vmor %vm136_vm2, %vm137_vm1 }
 0x12b   :  { %v132_v1 = vmul.f32 %v554_v43, %v131_v0 }
 0x12d   :  { %v133_v3 = vmul.f32 0.5, %v132_v1 }
 0x12f   :  { %v134_v7 = vsub.f32 1.5, %v133_v3 }
 0x131   :  { %v135_v9 = vmul.f32 %v554_v43, %v134_v7 }
 0x133   :  { %v139_v18 = vsel %vm138_vm3, %v554_v43, %v135_v9 }
 0x134   :  { %v140_v22 = vmul.f32 %v139_v18, %v763_v53  ;;  %v141_v23 = vmul.f32 %v139_v18, %v766_v54  ;;  %v142_v24 = vmul.f32 %v139_v18, %v769_v55  ;;  %v143_v26 = vmul.f32 %v139_v18, %v772_v59 }
 0x135   :  { %v144_v10 = vmul.f32 %v139_v18, %v779_v2  ;;  %v145_v27 = vmul.f32 %v139_v18, %v784_v13  ;;  %v146_v34 = vmul.f32 %v139_v18, %v789_v19  ;;  %v156_v53 = vperm.slane %v148_v4, 6 }
 0x136   :  { %v166_v29 = vmul.f32 %v150_v11, %v140_v22  ;;  %v167_v30 = vmul.f32 %v151_v6, %v141_v23  ;;  %v168_v31 = vmul.f32 %v152_v16, %v142_v24  ;;  %v169_v32 = vmul.f32 %v153_v17, %v143_v26 }
 0x137   :  { %v170_v12 = vmul.f32 %v154_v21, %v144_v10  ;;  %v147_v59 = vmul.f32 %v139_v18, %v794_v25  ;;  %v171_v38 = vmul.f32 %v155_v28, %v145_v27  ;;  %v172_v44 = vmul.f32 %v156_v53, %v146_v34  ;;  %v550_v27 = vld [vmem:[%s821_s4] ss:$0 sm:$0xff] }
 0x138   :  { %v192_v35 = vadd.f32 %v176_v14, %v166_v29  ;;  %v193_v54 = vadd.f32 %v177_v15, %v167_v30  ;;  %v194_v36 = vadd.f32 %v178_v20, %v168_v31  ;;  %v195_v55 = vadd.f32 %v179_v8, %v169_v32 }
 0x139   :  { %v196_v19 = vadd.f32 %v180_v33, %v170_v12  ;;  %v173_v45 = vmul.f32 %v157_v37, %v147_v59  ;;  %v197_v49 = vadd.f32 %v181_v39, %v171_v38  ;;  %v198_v51 = vadd.f32 %v182_v40, %v172_v44 }
 0x13a   :  { %v200_v2 = vmul.f32 %v192_v35, %v192_v35  ;;  %372 = vmatmul.f32.vlgmr.msra.gmra.mxu0 %v192_v35  ;;  %v201_v13 = vmul.f32 %v193_v54, %v193_v54  ;;  %392 = vmatmul.f32.vlgmr.msra.gmra.mxu1 %v193_v54  ;;  %v202_v42 = vmul.f32 %v194_v36, %v194_v36 }
 0x13b   :  { %412 = vmatmul.f32.vlgmr.msra.gmra.mxu2 %v194_v36  ;;  %432 = vmatmul.f32.vlgmr.msra.gmra.mxu3 %v195_v55  ;;  %v203_v48 = vmul.f32 %v195_v55, %v195_v55  ;;  %v204_v50 = vmul.f32 %v196_v19, %v196_v19  ;;  %v199_v52 = vadd.f32 %v183_v46, %v173_v45 }
 0x13c   :  { %v208_v41 = vadd.f32 %v201_v13, %v200_v2  ;;  %v205_v56 = vmul.f32 %v197_v49, %v197_v49  ;;  %v206_v58 = vmul.f32 %v198_v51, %v198_v51 }
 0x13d   :  { %v207_v61 = vmul.f32 %v199_v52, %v199_v52 }
 0x13e   :  { %v209_v47 = vadd.f32 %v208_v41, %v202_v42 }
 0x140   :  { %v210_v25 = vadd.f32 %v209_v47, %v203_v48 }
 0x142   :  { %452 = vmatmul.f32.vlgmr.msrb.gmra.mxu0 %v196_v19  ;;  %472 = vmatmul.f32.vlgmr.msrb.gmra.mxu1 %v197_v49  ;;  %v211_v57 = vadd.f32 %v210_v25, %v204_v50 }
 0x143   :  { %492 = vmatmul.f32.vlgmr.msrb.gmra.mxu2 %v198_v51  ;;  %512 = vmatmul.f32.vlgmr.msrb.gmra.mxu3 %v199_v52 }
 0x144   :  { %v212_v60 = vadd.f32 %v211_v57, %v205_v56 }
 0x146   :  { %v213_v62 = vadd.f32 %v212_v60, %v206_v58 }
 0x148   :  { %v214_v63 = vadd.f32 %v213_v62, %v207_v61 }
 0x14a   :  { %215 = vadd.xlane.f32.xlu1 %v214_v63 }
 0x1b7   :  { %v373_v43 = vpop.f32.mrf.mxu0  ;;  %v393_v0 = vpop.f32.mrf.mxu1 }
 0x1b8   :  { %v394_v1 = vadd.f32 %v393_v0, %v373_v43 }
 0x1bd   :  { %v216_v3 = vpop.xlane.xlu1 %215 }
 0x1be   :  { %v413_v4 = vpop.f32.mrf.mxu2  ;;  %v217_v5 = vmax.f32 %v216_v3, 1e-24  ;;  %v433_v9 = vpop.f32.mrf.mxu3 }
 0x1bf   :  { %v414_v7 = vadd.f32 %v413_v4, %v394_v1  ;;  %v453_v14 = vpop.f32.mrf.mxu0  ;;  %v473_v17 = vpop.f32.mrf.mxu1 }
 0x1c0   :  { %555 = vrsqrt.f32 %v217_v5  ;;  %vm224_vm5 = vweird.f32 %v217_v5 }
 0x1c1   :  { %v434_v11 = vadd.f32 %v433_v9, %v414_v7 }
 0x1c3   :  { %v454_v6 = vadd.f32 %v453_v14, %v434_v11 }
 0x1c5   :  { %v474_v18 = vadd.f32 %v473_v17, %v454_v6 }
 0x1c6   :  { %v556_v15 = vpop.eup %555  ;;  %v493_v8 = vpop.f32.mrf.mxu2 }
 0x1c7   :  { %v219_v16 = vmul.f32 %v556_v15, %v217_v5  ;;  %v494_v22 = vadd.f32 %v493_v8, %v474_v18  ;;  %vm225_vm4 = vweird.f32 %v556_v15  ;;  %v513_v26 = vpop.f32.mrf.mxu3 }
 0x1c8   :  { %vm226_vm6 = vmor %vm224_vm5, %vm225_vm4 }
 0x1c9   :  { %v220_v20 = vmul.f32 %v556_v15, %v219_v16  ;;  %v514_v10 = vadd.f32 %v513_v26, %v494_v22 }
 0x1cb   :  { %v221_v21 = vmul.f32 0.5, %v220_v20 }
 0x1cd   :  { %v222_v23 = vsub.f32 1.5, %v221_v21 }
 0x1cf   :  { %v223_v24 = vmul.f32 %v556_v15, %v222_v23 }
 0x1d1   :  { %v227_v28 = vsel %vm226_vm6, %v556_v15, %v223_v24 }
 0x1d2   :  { %v516_v29 = vmul.f32 %v514_v10, %v227_v28 }
 0x1d4   :  { %v521_v30 = vadd.f32 %v550_v27, %v516_v29 }
 0x1d6   :  { %522 = vst [vmem:[#allocation10] sm:$0xff] %v521_v30 }
 0x1d7   :  { %533 = dma.vmem_to_hbm [thread:$0]  %s529_s14, 128, %s531_s17, [#allocation4]  }
 0x1d8   :  { %683 = dma.done.wait [#allocation4], 128  }
 0x1d9   :  { %684 = vsyncadd [#allocation4], 4294967168 }
 0x1da   :  { %538 = vsyncpa [#allocation3], 1 }
 0x1db   :  { %539 = vsyncpa [#allocation6], 1 }
 0x1dc   :  { %540 = vsyncpa [#allocation9], 1 }
 0x1dd   :  { %541 = vsyncpa [#allocation4], 1 }

</bundles_post_ra>
